<compile_context>
chip_gen: v7x
topology: tpu7x:2x2x1
jax: 0.10.0
libtpu: 0.0.40
codegen_flags: <defaults>
</compile_context>

<pallas_src>
import functools

import jax
import jax.numpy as jnp
from jax.experimental import pallas as pl
from jax.experimental.pallas import tpu as pltpu


D_IN = 28 * 28     # 784
D_H = 512
D_OUT = 10
D_OUT_PAD = 128    # lane-dense padded logits width (multiple of 128)


def _round_up(x, m):
    return (x + m - 1) // m * m


def _choose_tile(B, batch_tile):
    """Sublane-aligned batch tile that splits B evenly and, when B is large
    enough, guarantees >=2 grid steps (keeps both TCs busy on v7x)."""
    batch_tile = max(8, _round_up(int(batch_tile), 8))
    steps = pl.cdiv(B, batch_tile)                     # steps at requested tile
    steps = max(steps, min(2, pl.cdiv(B, 8)))          # prefer >=2 steps if B > 8
    return _round_up(pl.cdiv(B, steps), 8)             # even split, /8 aligned


def _mlp_kernel(x_ref, w1_ref, b1_ref, w2_ref, b2_ref, w3_ref, b3_ref, o_ref):
    # Cast x to the MXU operand dtype in VMEM (hidden under the MXU work).
    x = x_ref[...].astype(w1_ref.dtype)
    # Layer 1: (T, 784) @ (784, 512); f32 accumulation; bias + ReLU in f32.
    h1 = jnp.dot(x, w1_ref[...], preferred_element_type=jnp.float32)
    h1 = jnp.maximum(h1 + b1_ref[...], 0.0)
    # Layer 2: (T, 512) @ (512, 512).
    h2 = jnp.dot(h1.astype(w2_ref.dtype), w2_ref[...],
                 preferred_element_type=jnp.float32)
    h2 = jnp.maximum(h2 + b2_ref[...], 0.0)
    # Layer 3: (T, 512) @ (512, 128) (zero-padded from 10 -> lane dense).
    h3 = jnp.dot(h2.astype(w3_ref.dtype), w3_ref[...],
                 preferred_element_type=jnp.float32)
    o_ref[...] = jnp.maximum(h3 + b3_ref[...], 0.0).astype(o_ref.dtype)


def prepare_params(params, compute_dtype=jnp.bfloat16):
    """One-time conversion: bf16 weights for the MXU, w3/b3 padded to 128 cols.
    Biases stay f32 (epilogue math is f32)."""
    w1, b1, w2, b2, w3, b3 = params
    w3p = jnp.pad(w3, ((0, 0), (0, D_OUT_PAD - D_OUT)))
    b3p = jnp.pad(b3, ((0, 0), (0, D_OUT_PAD - D_OUT)))
    return (w1.astype(compute_dtype), b1.astype(jnp.float32),
            w2.astype(compute_dtype), b2.astype(jnp.float32),
            w3p.astype(compute_dtype), b3p.astype(jnp.float32))


@functools.partial(jax.jit, static_argnames=("batch_tile",))
def neural_network_forward(x, prepared_params, *, batch_tile=1024):
    """x: (B, 1, 28, 28) float32 (NCHW, like PyTorch).
    prepared_params: output of prepare_params(). Returns (B, 10) float32."""
    w1, b1, w2, b2, w3, b3 = prepared_params
    B = x.shape[0]
    x_flat = x.reshape(B, -1)                 # nn.Flatten: (B, 784)
    assert x_flat.shape[1] == D_IN

    tile = _choose_tile(B, batch_tile)
    grid_steps = pl.cdiv(B, tile)
    B_pad = grid_steps * tile
    if B_pad != B:
        x_flat = jnp.pad(x_flat, ((0, B_pad - B), (0, 0)))

    # Weights/biases are small (<1.5 MiB) with constant index_maps, so they
    # stay resident in VMEM across grid steps; only x / out tiles stream.
    full = lambda shape: pl.BlockSpec(shape, lambda i: (0, 0))

    wbytes = (D_IN * D_H + D_H * D_H + D_H * D_OUT_PAD) * 2 \
        + (2 * D_H + D_OUT_PAD) * 4
    cost = pl.CostEstimate(
        flops=2 * B_pad * (D_IN * D_H + D_H * D_H + D_H * D_OUT_PAD),
        transcendentals=0,
        bytes_accessed=B_pad * D_IN * 4 + wbytes + B_pad * D_OUT_PAD * 4,
    )

    out = pl.pallas_call(
        _mlp_kernel,
        out_shape=jax.ShapeDtypeStruct((B_pad, D_OUT_PAD), jnp.float32),
        grid_spec=pltpu.PrefetchScalarGridSpec(
            num_scalar_prefetch=0,
            grid=(grid_steps,),
            in_specs=[
                pl.BlockSpec((tile, D_IN), lambda i: (i, 0)),  # x tile (f32)
                full((D_IN, D_H)),        # w1 (bf16)
                full((1, D_H)),           # b1 (f32)
                full((D_H, D_H)),         # w2 (bf16)
                full((1, D_H)),           # b2 (f32)
                full((D_H, D_OUT_PAD)),   # w3 (bf16, padded)
                full((1, D_OUT_PAD)),     # b3 (f32, padded)
            ],
            out_specs=pl.BlockSpec((tile, D_OUT_PAD), lambda i: (i, 0)),
        ),
        compiler_params=pltpu.CompilerParams(
            dimension_semantics=("parallel",),
            vmem_limit_bytes=48 * 1024 * 1024,
        ),
        cost_estimate=cost,
    )(x_flat, w1, b1, w2, b2, w3, b3)

    return out[:B, :D_OUT]


def init_params(key):
    """Deterministic init mimicking PyTorch nn.Linear default:
    U(-1/sqrt(fan_in), 1/sqrt(fan_in)) for weights and biases."""
    ks = jax.random.split(key, 6)

    def linear(kw, kb, fan_in, fan_out):
        bound = 1.0 / jnp.sqrt(fan_in)
        w = jax.random.uniform(kw, (fan_in, fan_out), jnp.float32, -bound, bound)
        b = jax.random.uniform(kb, (1, fan_out), jnp.float32, -bound, bound)
        return w, b

    w1, b1 = linear(ks[0], ks[1], D_IN, D_H)
    w2, b2 = linear(ks[2], ks[3], D_H, D_H)
    w3, b3 = linear(ks[4], ks[5], D_H, D_OUT)
    return (w1, b1, w2, b2, w3, b3)


def reference_forward(x, params, compute_dtype=jnp.float32):
    """Pure-JAX reference. With compute_dtype=bfloat16 it mirrors the kernel's
    operand cast (f32 accumulation, f32 bias/ReLU)."""
    w1, b1, w2, b2, w3, b3 = params
    h = x.reshape(x.shape[0], -1).astype(compute_dtype)
    h = jnp.maximum(
        jnp.dot(h, w1.astype(compute_dtype),
                preferred_element_type=jnp.float32) + b1, 0.0)
    h = jnp.maximum(
        jnp.dot(h.astype(compute_dtype), w2.astype(compute_dtype),
                preferred_element_type=jnp.float32) + b2, 0.0)
    h = jnp.maximum(
        jnp.dot(h.astype(compute_dtype), w3.astype(compute_dtype),
                preferred_element_type=jnp.float32) + b3, 0.0)
    return h


if __name__ == "__main__":
    key = jax.random.PRNGKey(0)
    k_param, k_x = jax.random.split(key)

    params = init_params(k_param)
    prepared = prepare_params(params)           # one-time cast/pad, outside jit

    # Small MNIST-like NCHW input; B=4 (not a multiple of 8) exercises the
    # batch zero-padding path.
    B = 4
    x = jax.random.normal(k_x, (B, 1, 28, 28), jnp.float32)

    out = neural_network_forward(x, prepared)
    out = jax.block_until_ready(out)
    assert out.shape == (B, D_OUT)

    # Match a reference that uses the same bf16 MXU-operand cast (tight tol).
    ref_bf16 = reference_forward(x, params, compute_dtype=jnp.bfloat16)
    assert jnp.allclose(out, ref_bf16, atol=1e-2, rtol=1e-2), "mismatch vs bf16 ref"

    # Sanity-check against the pure-f32 forward (bf16 rounding slack).
    ref_f32 = reference_forward(x, params, compute_dtype=jnp.float32)
    assert jnp.allclose(out, ref_f32, atol=5e-2, rtol=5e-2), "mismatch vs f32 ref"

    # NOTE: the original PyTorch module really does apply ReLU after the final
    # Linear (relu3), so the kernel keeps it to preserve forward semantics.
    print("KERNEL_OK")
</pallas_src>

<mosaic_0001>
module attributes {stable_mosaic.version = 11 : i64} {
  func.func @_mlp_kernel(%arg0: i32, %arg1: memref<8x784xf32, #tpu.memory_space<vmem>>, %arg2: memref<784x512xbf16, #tpu.memory_space<vmem>>, %arg3: memref<1x512xf32, #tpu.memory_space<vmem>>, %arg4: memref<512x512xbf16, #tpu.memory_space<vmem>>, %arg5: memref<1x512xf32, #tpu.memory_space<vmem>>, %arg6: memref<512x128xbf16, #tpu.memory_space<vmem>>, %arg7: memref<1x128xf32, #tpu.memory_space<vmem>>, %arg8: memref<8x128xf32, #tpu.memory_space<vmem>>) attributes {dimension_semantics = [#tpu.dimension_semantics<parallel>], iteration_bounds = array<i64: 1>, scalar_prefetch = 0 : i64, scratch_operands = 0 : i64, tpu.core_type = #tpu.core_type<tc>, window_params = [{transform_indices = @transform_0, window_bounds = array<i64: 8, 784>}, {pipeline_mode = #tpu.pipeline_mode<synchronous>, transform_indices = @transform_1, window_bounds = array<i64: 784, 512>}, {pipeline_mode = #tpu.pipeline_mode<synchronous>, transform_indices = @transform_2, window_bounds = array<i64: 1, 512>}, {pipeline_mode = #tpu.pipeline_mode<synchronous>, transform_indices = @transform_3, window_bounds = array<i64: 512, 512>}, {pipeline_mode = #tpu.pipeline_mode<synchronous>, transform_indices = @transform_4, window_bounds = array<i64: 1, 512>}, {pipeline_mode = #tpu.pipeline_mode<synchronous>, transform_indices = @transform_5, window_bounds = array<i64: 512, 128>}, {pipeline_mode = #tpu.pipeline_mode<synchronous>, transform_indices = @transform_6, window_bounds = array<i64: 1, 128>}, {transform_indices = @transform_7, window_bounds = array<i64: 8, 128>}]} {
    %c0 = arith.constant 0 : index
    %c0_0 = arith.constant 0 : index
    %0 = vector.load %arg1[%c0, %c0_0] : memref<8x784xf32, #tpu.memory_space<vmem>>, vector<8x784xf32>
    %1 = arith.truncf %0 : vector<8x784xf32> to vector<8x784xbf16>
    %c0_1 = arith.constant 0 : index
    %c0_2 = arith.constant 0 : index
    %2 = vector.load %arg2[%c0_1, %c0_2] : memref<784x512xbf16, #tpu.memory_space<vmem>>, vector<784x512xbf16>
    %cst = arith.constant dense<0.000000e+00> : vector<8x512xf32>
    %3 = tpu.matmul %1, %2, %cst {dimension_numbers = #tpu.dot_dimension_numbers<[1], [0], [0], [1], [0, 0, 1, 1], [], []>} : vector<8x784xbf16>, vector<784x512xbf16>, vector<8x512xf32> -> vector<8x512xf32>
    %c0_3 = arith.constant 0 : index
    %c0_4 = arith.constant 0 : index
    %4 = vector.load %arg3[%c0_3, %c0_4] : memref<1x512xf32, #tpu.memory_space<vmem>>, vector<1x512xf32>
    %5 = vector.broadcast %4 : vector<1x512xf32> to vector<8x512xf32>
    %6 = arith.addf %3, %5 : vector<8x512xf32>
    %cst_5 = arith.constant 0.000000e+00 : f32
    %7 = vector.broadcast %cst_5 : f32 to vector<8x512xf32>
    %8 = arith.maximumf %6, %7 : vector<8x512xf32>
    %9 = arith.truncf %8 : vector<8x512xf32> to vector<8x512xbf16>
    %c0_6 = arith.constant 0 : index
    %c0_7 = arith.constant 0 : index
    %10 = vector.load %arg4[%c0_6, %c0_7] : memref<512x512xbf16, #tpu.memory_space<vmem>>, vector<512x512xbf16>
    %cst_8 = arith.constant dense<0.000000e+00> : vector<8x512xf32>
    %11 = tpu.matmul %9, %10, %cst_8 {dimension_numbers = #tpu.dot_dimension_numbers<[1], [0], [0], [1], [0, 0, 1, 1], [], []>} : vector<8x512xbf16>, vector<512x512xbf16>, vector<8x512xf32> -> vector<8x512xf32>
    %c0_9 = arith.constant 0 : index
    %c0_10 = arith.constant 0 : index
    %12 = vector.load %arg5[%c0_9, %c0_10] : memref<1x512xf32, #tpu.memory_space<vmem>>, vector<1x512xf32>
    %13 = vector.broadcast %12 : vector<1x512xf32> to vector<8x512xf32>
    %14 = arith.addf %11, %13 : vector<8x512xf32>
    %cst_11 = arith.constant 0.000000e+00 : f32
    %15 = vector.broadcast %cst_11 : f32 to vector<8x512xf32>
    %16 = arith.maximumf %14, %15 : vector<8x512xf32>
    %17 = arith.truncf %16 : vector<8x512xf32> to vector<8x512xbf16>
    %c0_12 = arith.constant 0 : index
    %c0_13 = arith.constant 0 : index
    %18 = vector.load %arg6[%c0_12, %c0_13] : memref<512x128xbf16, #tpu.memory_space<vmem>>, vector<512x128xbf16>
    %cst_14 = arith.constant dense<0.000000e+00> : vector<8x128xf32>
    %19 = tpu.matmul %17, %18, %cst_14 {dimension_numbers = #tpu.dot_dimension_numbers<[1], [0], [0], [1], [0, 0, 1, 1], [], []>} : vector<8x512xbf16>, vector<512x128xbf16>, vector<8x128xf32> -> vector<8x128xf32>
    %c0_15 = arith.constant 0 : index
    %c0_16 = arith.constant 0 : index
    %20 = vector.load %arg7[%c0_15, %c0_16] : memref<1x128xf32, #tpu.memory_space<vmem>>, vector<1x128xf32>
    %21 = vector.broadcast %20 : vector<1x128xf32> to vector<8x128xf32>
    %22 = arith.addf %19, %21 : vector<8x128xf32>
    %cst_17 = arith.constant 0.000000e+00 : f32
    %23 = vector.broadcast %cst_17 : f32 to vector<8x128xf32>
    %24 = arith.maximumf %22, %23 : vector<8x128xf32>
    %c0_18 = arith.constant 0 : index
    %c0_19 = arith.constant 0 : index
    %25 = vector.load %arg8[%c0_18, %c0_19] : memref<8x128xf32, #tpu.memory_space<vmem>>, vector<8x128xf32>
    tpu.vector_store %arg8[%c0_18, %c0_19], %24 {strides = array<i32>} : memref<8x128xf32, #tpu.memory_space<vmem>>, vector<8x128xf32>,
    return
  }
  func.func @transform_0(%arg0: i32) -> (i32, i32) {
    %c0_i32 = arith.constant 0 : i32
    %c0_i32_0 = arith.constant 0 : i32
    return %arg0, %c0_i32 : i32, i32
  }
  func.func @transform_1(%arg0: i32) -> (i32, i32) {
    %c0_i32 = arith.constant 0 : i32
    %c0_i32_0 = arith.constant 0 : i32
    %c0_i32_1 = arith.constant 0 : i32
    return %c0_i32, %c0_i32_0 : i32, i32
  }
  func.func @transform_2(%arg0: i32) -> (i32, i32) {
    %c0_i32 = arith.constant 0 : i32
    %c0_i32_0 = arith.constant 0 : i32
    %c0_i32_1 = arith.constant 0 : i32
    return %c0_i32, %c0_i32_0 : i32, i32
  }
  func.func @transform_3(%arg0: i32) -> (i32, i32) {
    %c0_i32 = arith.constant 0 : i32
    %c0_i32_0 = arith.constant 0 : i32
    %c0_i32_1 = arith.constant 0 : i32
    return %c0_i32, %c0_i32_0 : i32, i32
  }
  func.func @transform_4(%arg0: i32) -> (i32, i32) {
    %c0_i32 = arith.constant 0 : i32
    %c0_i32_0 = arith.constant 0 : i32
    %c0_i32_1 = arith.constant 0 : i32
    return %c0_i32, %c0_i32_0 : i32, i32
  }
  func.func @transform_5(%arg0: i32) -> (i32, i32) {
    %c0_i32 = arith.constant 0 : i32
    %c0_i32_0 = arith.constant 0 : i32
    %c0_i32_1 = arith.constant 0 : i32
    return %c0_i32, %c0_i32_0 : i32, i32
  }
  func.func @transform_6(%arg0: i32) -> (i32, i32) {
    %c0_i32 = arith.constant 0 : i32
    %c0_i32_0 = arith.constant 0 : i32
    %c0_i32_1 = arith.constant 0 : i32
    return %c0_i32, %c0_i32_0 : i32, i32
  }
  func.func @transform_7(%arg0: i32) -> (i32, i32) {
    %c0_i32 = arith.constant 0 : i32
    %c0_i32_0 = arith.constant 0 : i32
    return %arg0, %c0_i32 : i32, i32
  }
}

</mosaic_0001>

<bundles_post_ra>
// kernel: neural_network_forward.1
= control target key start
LH: loop header
LB: loop body
LE: loop exit
PB: predicated region body
PF: predicated region fallthrough
CT: control target
= control target key end

     0   :  { %12 = vsyncpa [#allocation3], 0  ;;  %s4163_s0 = inlined_call_operand.vmem [shape: f32[8,784], index: 0, kind: input, shape index: {}]   ;;  %s4164_s1 = inlined_call_operand.hbm [shape: bf16[784,512], index: 1, kind: input, shape index: {}]   ;;  %s4165_s2 = inlined_call_operand.vmem [shape: f32[1,512], index: 2, kind: input, shape index: {}]   ;;  %s4166_s3 = inlined_call_operand.hbm [shape: bf16[512,512], index: 3, kind: input, shape index: {}]   ;;  %s4167_s4 = inlined_call_operand.vmem [shape: f32[1,512], index: 4, kind: input, shape index: {}]   ;;  %s4168_s5 = inlined_call_operand.vmem [shape: bf16[512,128], index: 5, kind: input, shape index: {}]   ;;  %s4169_s6 = inlined_call_operand.vmem [shape: f32[1,128], index: 6, kind: input, shape index: {}]   ;;  %s4170_s7 = inlined_call_operand.vmem [shape: f32[8,128], index: 7, kind: output, shape index: {}]  }
   0x1   :  { %13 = vsyncpa [#allocation5], 0  ;;  %s3934_s24 = smov [#allocation2]   ;;  %s3886_s28 = scalar_lea.hbm %s4164_s1, 25088 }
   0x2   :  { %s21_s25 = sshll.u32 %s3934_s24, 4  ;;  %p3887_p0 = scmp.ne.s32.totalorder %s4164_s1, %s3886_s28  ;;  %s22_s25 = int_to_ptr.vmem [resolvable:$true] %s21_s25 }
   0x3   :  { %p3890_p1 = scmp.lt.u32.totalorder %s3886_s28, %s4164_s1 }
   0x5   :  { %p3892_p2 = pnand %p3890_p1, %p3887_p0 }
   0x7   :  { %3895 = shalt.err (!%p3892_p2)
}
   0x8   :  { %s3896_s10 = scalar_lea.vmem %s22_s25, 25088  ;;  %p3901_p4 = scmp.lt.s32.totalorder %s22_s25, %s22_s25 }
   0x9   :  { %p3897_p3 = scmp.ne.s32.totalorder %s22_s25, %s3896_s10  ;;  %p3902_p5 = scmp.lt.s32.totalorder %s3896_s10, %s3896_s10 }
   0xb   :  { %p3903_p6 = por %p3902_p5, %p3901_p4 }
   0xd   :  { %p3904_p7 = pnand %p3903_p6, %p3897_p3 }
   0xf   :  { %3907 = shalt.err (!%p3904_p7)
}
  0x10   :  { %s3935_s11 = smov 256   ;;  %s3936_s12 = smov 16  }
  0x11   :  { %27 = dma.hbm_to_vmem [thread:$0]  %s4164_s1, 25088, %s22_s25, [#allocation3], %s3935_s11, %s3935_s11, %s3936_s12  }
  0x12   :  { %s3937_s15 = smov [#allocation4]   ;;  %s3908_s19 = scalar_lea.hbm %s4166_s3, 16384 }
  0x13   :  { %s35_s16 = sshll.u32 %s3937_s15, 4  ;;  %p3909_p8 = scmp.ne.s32.totalorder %s4166_s3, %s3908_s19  ;;  %s36_s16 = int_to_ptr.vmem [resolvable:$true] %s35_s16 }
  0x14   :  { %p3912_p9 = scmp.lt.u32.totalorder %s3908_s19, %s4166_s3 }
  0x16   :  { %p3914_p10 = pnand %p3912_p9, %p3909_p8 }
  0x18   :  { %3917 = shalt.err (!%p3914_p10)
}
  0x19   :  { %s3918_s24 = scalar_lea.vmem %s36_s16, 16384  ;;  %p3923_p12 = scmp.lt.s32.totalorder %s36_s16, %s36_s16 }
  0x1a   :  { %p3919_p11 = scmp.ne.s32.totalorder %s36_s16, %s3918_s24  ;;  %p3924_p13 = scmp.lt.s32.totalorder %s3918_s24, %s3918_s24 }
  0x1c   :  { %p3925_p0 = por %p3924_p13, %p3923_p12 }
  0x1e   :  { %p3926_p1 = pnand %p3925_p0, %p3919_p11 }
  0x20   :  { %3929 = shalt.err (!%p3926_p1)
}
  0x21   :  { %41 = dma.hbm_to_vmem [thread:$0]  %s4166_s3, 16384, %s36_s16, [#allocation5], %s3935_s11, %s3935_s11, %s3936_s12  }
  0x22   :  { %3930 = dma.done.wait [#allocation3], 25088  }
  0x23   :  { %3931 = vsyncadd [#allocation3], 4294942208 }
  0x24   :  { %3932 = dma.done.wait [#allocation5], 16384  }
  0x25   :  { %3933 = vsyncadd [#allocation5], 4294950912  ;;  %v3368_v0 = vld [vmem:[#allocation2 + $0x4] ss:$16 sps:$4 sm:$0xff]   ;;  %v3370_v1 = vld [vmem:[#allocation2 + $0xc] ss:$16 sps:$4 sm:$0xff]  }
  0x26   :  { %1271 = vmatprep.subr.bf16.mxu0 %v3368_v0  ;;  %v3372_v2 = vld [vmem:[#allocation2] ss:$16 sps:$4 sm:$0xff]   ;;  %v3373_v3 = vld [vmem:[#allocation2 + $0x8] ss:$16 sps:$4 sm:$0xff]   ;;  %1435 = vmatprep.subr.bf16.mxu1 %v3370_v1  ;;  %v3374_v4 = vld [vmem:[#allocation2 + $0x24] ss:$16 sps:$4 sm:$0xff]  }
  0x27   :  { %1272 = vmatpush1.bf16.msra.mxu0 %v3372_v2  ;;  %1436 = vmatpush1.bf16.msra.mxu1 %v3373_v3  ;;  %v3376_v5 = vld [vmem:[#allocation2 + $0x2c] ss:$16 sps:$4 sm:$0xff]   ;;  %v3378_v6 = vld [vmem:[#allocation2 + $0x20] ss:$16 sps:$4 sm:$0xff]   ;;  %v3379_v7 = vld [vmem:[#allocation2 + $0x28] ss:$16 sps:$4 sm:$0xff]  }
  0x28   :  { %1273 = vmatprep.subr.bf16.mxu0 %v3374_v4  ;;  %1437 = vmatprep.subr.bf16.mxu1 %v3376_v5  ;;  %v3380_v8 = vld [vmem:[#allocation2 + $0x44] ss:$16 sps:$4 sm:$0xff]   ;;  %v3382_v9 = vld [vmem:[#allocation2 + $0x4c] ss:$16 sps:$4 sm:$0xff]   ;;  %v3384_v10 = vld [vmem:[#allocation2 + $0x40] ss:$16 sps:$4 sm:$0xff]  }
  0x29   :  { %v3385_v11 = vld [vmem:[#allocation2 + $0x48] ss:$16 sps:$4 sm:$0xff]   ;;  %v3386_v12 = vld [vmem:[#allocation2 + $0x64] ss:$16 sps:$4 sm:$0xff]   ;;  %v3388_v13 = vld [vmem:[#allocation2 + $0x6c] ss:$16 sps:$4 sm:$0xff]  }
  0x2a   :  { %v3390_v14 = vld [vmem:[#allocation2 + $0x60] ss:$16 sps:$4 sm:$0xff]   ;;  %v3391_v15 = vld [vmem:[#allocation2 + $0x68] ss:$16 sps:$4 sm:$0xff]   ;;  %v3392_v16 = vld [vmem:[#allocation2 + $0x84] ss:$16 sps:$4 sm:$0xff]  }
  0x2b   :  { %1274 = vmatpush1.bf16.msra.mxu0 %v3378_v6  ;;  %1438 = vmatpush1.bf16.msra.mxu1 %v3379_v7  ;;  %v3394_v17 = vld [vmem:[#allocation2 + $0x8c] ss:$16 sps:$4 sm:$0xff]   ;;  %v3396_v18 = vld [vmem:[#allocation2 + $0x80] ss:$16 sps:$4 sm:$0xff]   ;;  %v3397_v19 = vld [vmem:[#allocation2 + $0x88] ss:$16 sps:$4 sm:$0xff]  }
  0x2c   :  { %1275 = vmatprep.subr.bf16.mxu0 %v3380_v8  ;;  %1439 = vmatprep.subr.bf16.mxu1 %v3382_v9  ;;  %v3398_v20 = vld [vmem:[#allocation2 + $0xa4] ss:$16 sps:$4 sm:$0xff]   ;;  %v3400_v21 = vld [vmem:[#allocation2 + $0xac] ss:$16 sps:$4 sm:$0xff]   ;;  %v3402_v22 = vld [vmem:[#allocation2 + $0xa0] ss:$16 sps:$4 sm:$0xff]  }
  0x2d   :  { %v3403_v23 = vld [vmem:[#allocation2 + $0xa8] ss:$16 sps:$4 sm:$0xff]   ;;  %v3404_v24 = vld [vmem:[#allocation2 + $0xc4] ss:$16 sps:$4 sm:$0xff]   ;;  %v3406_v25 = vld [vmem:[#allocation2 + $0xcc] ss:$16 sps:$4 sm:$0xff]  }
  0x2e   :  { %v3408_v26 = vld [vmem:[#allocation2 + $0xc0] ss:$16 sps:$4 sm:$0xff]   ;;  %v3409_v27 = vld [vmem:[#allocation2 + $0xc8] ss:$16 sps:$4 sm:$0xff]   ;;  %v3410_v28 = vld [vmem:[#allocation2 + $0xe4] ss:$16 sps:$4 sm:$0xff]  }
  0x2f   :  { %1276 = vmatpush1.bf16.msra.mxu0 %v3384_v10  ;;  %1440 = vmatpush1.bf16.msra.mxu1 %v3385_v11  ;;  %v3412_v29 = vld [vmem:[#allocation2 + $0xec] ss:$16 sps:$4 sm:$0xff]   ;;  %v3414_v30 = vld [vmem:[#allocation2 + $0xe0] ss:$16 sps:$4 sm:$0xff]   ;;  %v3415_v31 = vld [vmem:[#allocation2 + $0xe8] ss:$16 sps:$4 sm:$0xff]  }
  0x30   :  { %1277 = vmatprep.subr.bf16.mxu0 %v3386_v12  ;;  %1441 = vmatprep.subr.bf16.mxu1 %v3388_v13  ;;  %v3416_v32 = vld [vmem:[#allocation2 + $0x104] ss:$16 sps:$4 sm:$0xff]   ;;  %v3418_v33 = vld [vmem:[#allocation2 + $0x10c] ss:$16 sps:$4 sm:$0xff]   ;;  %v3420_v34 = vld [vmem:[#allocation2 + $0x100] ss:$16 sps:$4 sm:$0xff]  }
  0x31   :  { %v3421_v35 = vld [vmem:[#allocation2 + $0x108] ss:$16 sps:$4 sm:$0xff]   ;;  %v3422_v36 = vld [vmem:[#allocation2 + $0x124] ss:$16 sps:$4 sm:$0xff]   ;;  %v3424_v37 = vld [vmem:[#allocation2 + $0x12c] ss:$16 sps:$4 sm:$0xff]  }
  0x32   :  { %v3426_v38 = vld [vmem:[#allocation2 + $0x120] ss:$16 sps:$4 sm:$0xff]   ;;  %v3427_v39 = vld [vmem:[#allocation2 + $0x128] ss:$16 sps:$4 sm:$0xff]   ;;  %v3428_v40 = vld [vmem:[#allocation2 + $0x144] ss:$16 sps:$4 sm:$0xff]  }
  0x33   :  { %1278 = vmatpush1.bf16.msra.mxu0 %v3390_v14  ;;  %1442 = vmatpush1.bf16.msra.mxu1 %v3391_v15  ;;  %v3430_v41 = vld [vmem:[#allocation2 + $0x14c] ss:$16 sps:$4 sm:$0xff]   ;;  %v3432_v42 = vld [vmem:[#allocation2 + $0x140] ss:$16 sps:$4 sm:$0xff]   ;;  %v3433_v43 = vld [vmem:[#allocation2 + $0x148] ss:$16 sps:$4 sm:$0xff]  }
  0x34   :  { %1279 = vmatprep.subr.bf16.mxu0 %v3392_v16  ;;  %1443 = vmatprep.subr.bf16.mxu1 %v3394_v17  ;;  %v3434_v44 = vld [vmem:[#allocation2 + $0x164] ss:$16 sps:$4 sm:$0xff]   ;;  %v3436_v45 = vld [vmem:[#allocation2 + $0x16c] ss:$16 sps:$4 sm:$0xff]   ;;  %v3438_v47 = vld [vmem:[#allocation2 + $0x160] ss:$16 sps:$4 sm:$0xff]  }
  0x35   :  { %v56_v46 = vld [vmem:[%s4163_s0 + $0x8] sm:$0xff]  ;;  %v3440_v50 = vld [vmem:[#allocation2 + $0x184] ss:$16 sps:$4 sm:$0xff]   ;;  %v3444_v52 = vld [vmem:[#allocation2 + $0x180] ss:$16 sps:$4 sm:$0xff]   ;;  %vm1267_vm0 = vcmask 130048  }
  0x36   :  { %v63_v48 = vpack.c.bf16 %v56_v46, %v56_v46  ;;  %v3439_v49 = vld [vmem:[#allocation2 + $0x168] ss:$16 sps:$4 sm:$0xff]   ;;  %v3442_v51 = vld [vmem:[#allocation2 + $0x18c] ss:$16 sps:$4 sm:$0xff]   ;;  %v3446_v54 = vld [vmem:[#allocation2 + $0x1a4] ss:$16 sps:$4 sm:$0xff]  }
  0x37   :  { %1280 = vmatpush1.bf16.msra.mxu0 %v3396_v18  ;;  %1444 = vmatpush1.bf16.msra.mxu1 %v3397_v19  ;;  %v3445_v53 = vld [vmem:[#allocation2 + $0x188] ss:$16 sps:$4 sm:$0xff]   ;;  %v3448_v55 = vld [vmem:[#allocation2 + $0x1ac] ss:$16 sps:$4 sm:$0xff]   ;;  %v3450_v56 = vld [vmem:[#allocation2 + $0x1a0] ss:$16 sps:$4 sm:$0xff]  }
  0x38   :  { %1281 = vmatprep.subr.bf16.mxu0 %v3398_v20  ;;  %1445 = vmatprep.subr.bf16.mxu1 %v3400_v21  ;;  %v3451_v57 = vld [vmem:[#allocation2 + $0x1a8] ss:$16 sps:$4 sm:$0xff]   ;;  %v3452_v58 = vld [vmem:[#allocation2 + $0x1c4] ss:$16 sps:$4 sm:$0xff]   ;;  %v3454_v59 = vld [vmem:[#allocation2 + $0x1cc] ss:$16 sps:$4 sm:$0xff]  }
  0x39   :  { %1303 = vmatprep.mubr.bf16.mxu0 %v63_v48  ;;  %1467 = vmatprep.mubr.bf16.mxu1 %v63_v48  ;;  %v3456_v60 = vld [vmem:[#allocation2 + $0x1c0] ss:$16 sps:$4 sm:$0xff]   ;;  %v3457_v61 = vld [vmem:[#allocation2 + $0x1c8] ss:$16 sps:$4 sm:$0xff]   ;;  %v3458_v62 = vld [vmem:[#allocation2 + $0x1e4] ss:$16 sps:$4 sm:$0xff]  }
  0x3a   :  { %v3460_v63 = vld [vmem:[#allocation2 + $0x1ec] ss:$16 sps:$4 sm:$0xff]   ;;  %v3462_v0 = vld [vmem:[#allocation2 + $0x1e0] ss:$16 sps:$4 sm:$0xff]   ;;  %v3463_v1 = vld [vmem:[#allocation2 + $0x1e8] ss:$16 sps:$4 sm:$0xff]  }
  0x3b   :  { %1282 = vmatpush1.bf16.msra.mxu0 %v3402_v22  ;;  %1446 = vmatpush1.bf16.msra.mxu1 %v3403_v23  ;;  %v55_v2 = vld [vmem:[%s4163_s0] sm:$0xff]  ;;  %v3469_v4 = vld [vmem:[#allocation2 + $0x20c] ss:$16 sps:$4 sm:$0xff]   ;;  %v3467_v7 = vld [vmem:[#allocation2 + $0x208] ss:$16 sps:$4 sm:$0xff]  }
  0x3c   :  { %1283 = vmatprep.subr.bf16.mxu0 %v3404_v24  ;;  %1447 = vmatprep.subr.bf16.mxu1 %v3406_v25  ;;  %v3466_v3 = vld [vmem:[#allocation2 + $0x204] ss:$16 sps:$4 sm:$0xff]   ;;  %v62_v5 = vpack.c.bf16 %v55_v2, %v55_v2  ;;  %v3464_v6 = vld [vmem:[#allocation2 + $0x200] ss:$16 sps:$4 sm:$0xff]   ;;  %v3475_v9 = vld [vmem:[#allocation2 + $0x22c] ss:$16 sps:$4 sm:$0xff]  }
  0x3d   :  { %v3472_v8 = vld [vmem:[#allocation2 + $0x224] ss:$16 sps:$4 sm:$0xff]   ;;  %v3470_v10 = vld [vmem:[#allocation2 + $0x220] ss:$16 sps:$4 sm:$0xff]   ;;  %v3473_v11 = vld [vmem:[#allocation2 + $0x228] ss:$16 sps:$4 sm:$0xff]  }
  0x3e   :  { %v3478_v12 = vld [vmem:[#allocation2 + $0x244] ss:$16 sps:$4 sm:$0xff]   ;;  %v3481_v13 = vld [vmem:[#allocation2 + $0x24c] ss:$16 sps:$4 sm:$0xff]   ;;  %v3476_v14 = vld [vmem:[#allocation2 + $0x240] ss:$16 sps:$4 sm:$0xff]  }
  0x3f   :  { %1284 = vmatpush1.bf16.msra.mxu0 %v3408_v26  ;;  %1448 = vmatpush1.bf16.msra.mxu1 %v3409_v27  ;;  %v3479_v15 = vld [vmem:[#allocation2 + $0x248] ss:$16 sps:$4 sm:$0xff]   ;;  %v3484_v16 = vld [vmem:[#allocation2 + $0x264] ss:$16 sps:$4 sm:$0xff]   ;;  %v3487_v17 = vld [vmem:[#allocation2 + $0x26c] ss:$16 sps:$4 sm:$0xff]  }
  0x40   :  { %1285 = vmatprep.subr.bf16.mxu0 %v3410_v28  ;;  %1449 = vmatprep.subr.bf16.mxu1 %v3412_v29  ;;  %v3482_v18 = vld [vmem:[#allocation2 + $0x260] ss:$16 sps:$4 sm:$0xff]   ;;  %v3485_v19 = vld [vmem:[#allocation2 + $0x268] ss:$16 sps:$4 sm:$0xff]   ;;  %v3490_v20 = vld [vmem:[#allocation2 + $0x284] ss:$16 sps:$4 sm:$0xff]  }
  0x41   :  { %v3493_v21 = vld [vmem:[#allocation2 + $0x28c] ss:$16 sps:$4 sm:$0xff]   ;;  %v3488_v22 = vld [vmem:[#allocation2 + $0x280] ss:$16 sps:$4 sm:$0xff]   ;;  %v3491_v23 = vld [vmem:[#allocation2 + $0x288] ss:$16 sps:$4 sm:$0xff]  }
  0x42   :  { %v3496_v24 = vld [vmem:[#allocation2 + $0x2a4] ss:$16 sps:$4 sm:$0xff]   ;;  %v3499_v25 = vld [vmem:[#allocation2 + $0x2ac] ss:$16 sps:$4 sm:$0xff]   ;;  %v3494_v26 = vld [vmem:[#allocation2 + $0x2a0] ss:$16 sps:$4 sm:$0xff]  }
  0x43   :  { %1286 = vmatpush1.bf16.msra.mxu0 %v3414_v30  ;;  %1450 = vmatpush1.bf16.msra.mxu1 %v3415_v31  ;;  %v3497_v27 = vld [vmem:[#allocation2 + $0x2a8] ss:$16 sps:$4 sm:$0xff]   ;;  %v3502_v28 = vld [vmem:[#allocation2 + $0x2c4] ss:$16 sps:$4 sm:$0xff]   ;;  %v3505_v29 = vld [vmem:[#allocation2 + $0x2cc] ss:$16 sps:$4 sm:$0xff]  }
  0x44   :  { %1287 = vmatprep.subr.bf16.mxu0 %v3416_v32  ;;  %1451 = vmatprep.subr.bf16.mxu1 %v3418_v33  ;;  %v58_v30 = vld [vmem:[%s4163_s0 + $0x18] sm:$0xff]  ;;  %v3500_v31 = vld [vmem:[#allocation2 + $0x2c0] ss:$16 sps:$4 sm:$0xff]   ;;  %v3526_v46 = vld [vmem:[#allocation2 + $0x344] ss:$16 sps:$4 sm:$0xff]  }
  0x45   :  { %v65_v32 = vpack.c.bf16 %v58_v30, %v58_v30  ;;  %v3503_v33 = vld [vmem:[#allocation2 + $0x2c8] ss:$16 sps:$4 sm:$0xff]   ;;  %v3524_v48 = vld [vmem:[#allocation2 + $0x340] ss:$16 sps:$4 sm:$0xff]   ;;  %v3556_v2 = vld [vmem:[#allocation2 + $0x3e4] ss:$16 sps:$4 sm:$0xff]  }
  0x46   :  { %v3592_v30 = vld [vmem:[#allocation2 + $0x4a4] ss:$16 sps:$4 sm:$0xff]  }
  0x47   :  { %1288 = vmatpush1.bf16.msra.mxu0 %v3420_v34  ;;  %1452 = vmatpush1.bf16.msra.mxu1 %v3421_v35  ;;  %v3508_v34 = vld [vmem:[#allocation2 + $0x2e4] ss:$16 sps:$4 sm:$0xff]   ;;  %v3511_v35 = vld [vmem:[#allocation2 + $0x2ec] ss:$16 sps:$4 sm:$0xff]  }
  0x48   :  { %1289 = vmatprep.subr.bf16.mxu0 %v3422_v36  ;;  %1453 = vmatprep.subr.bf16.mxu1 %v3424_v37  ;;  %v3506_v36 = vld [vmem:[#allocation2 + $0x2e0] ss:$16 sps:$4 sm:$0xff]   ;;  %v3509_v37 = vld [vmem:[#allocation2 + $0x2e8] ss:$16 sps:$4 sm:$0xff]  }
  0x4b   :  { %1290 = vmatpush1.bf16.msra.mxu0 %v3426_v38  ;;  %1454 = vmatpush1.bf16.msra.mxu1 %v3427_v39  ;;  %v3514_v38 = vld [vmem:[#allocation2 + $0x304] ss:$16 sps:$4 sm:$0xff]   ;;  %v3517_v39 = vld [vmem:[#allocation2 + $0x30c] ss:$16 sps:$4 sm:$0xff]  }
  0x4c   :  { %1291 = vmatprep.subr.bf16.mxu0 %v3428_v40  ;;  %1455 = vmatprep.subr.bf16.mxu1 %v3430_v41  ;;  %v3512_v40 = vld [vmem:[#allocation2 + $0x300] ss:$16 sps:$4 sm:$0xff]   ;;  %v3515_v41 = vld [vmem:[#allocation2 + $0x308] ss:$16 sps:$4 sm:$0xff]  }
  0x4f   :  { %1292 = vmatpush1.bf16.msra.mxu0 %v3432_v42  ;;  %1456 = vmatpush1.bf16.msra.mxu1 %v3433_v43  ;;  %v3520_v42 = vld [vmem:[#allocation2 + $0x324] ss:$16 sps:$4 sm:$0xff]   ;;  %v3523_v43 = vld [vmem:[#allocation2 + $0x32c] ss:$16 sps:$4 sm:$0xff]  }
  0x50   :  { %1293 = vmatprep.subr.bf16.mxu0 %v3434_v44  ;;  %1457 = vmatprep.subr.bf16.mxu1 %v3436_v45  ;;  %v3518_v44 = vld [vmem:[#allocation2 + $0x320] ss:$16 sps:$4 sm:$0xff]   ;;  %v3521_v45 = vld [vmem:[#allocation2 + $0x328] ss:$16 sps:$4 sm:$0xff]  }
  0x53   :  { %1294 = vmatpush1.bf16.msra.mxu0 %v3438_v47  ;;  %1458 = vmatpush1.bf16.msra.mxu1 %v3439_v49  ;;  %v3529_v47 = vld [vmem:[#allocation2 + $0x34c] ss:$16 sps:$4 sm:$0xff]   ;;  %v3527_v49 = vld [vmem:[#allocation2 + $0x348] ss:$16 sps:$4 sm:$0xff]  }
  0x54   :  { %1295 = vmatprep.subr.bf16.mxu0 %v3440_v50  ;;  %1459 = vmatprep.subr.bf16.mxu1 %v3442_v51  ;;  %v3532_v50 = vld [vmem:[#allocation2 + $0x364] ss:$16 sps:$4 sm:$0xff]   ;;  %v3535_v51 = vld [vmem:[#allocation2 + $0x36c] ss:$16 sps:$4 sm:$0xff]  }
  0x57   :  { %1296 = vmatpush1.bf16.msra.mxu0 %v3444_v52  ;;  %1460 = vmatpush1.bf16.msra.mxu1 %v3445_v53  ;;  %v3530_v52 = vld [vmem:[#allocation2 + $0x360] ss:$16 sps:$4 sm:$0xff]   ;;  %v3533_v53 = vld [vmem:[#allocation2 + $0x368] ss:$16 sps:$4 sm:$0xff]  }
  0x58   :  { %1297 = vmatprep.subr.bf16.mxu0 %v3446_v54  ;;  %1461 = vmatprep.subr.bf16.mxu1 %v3448_v55  ;;  %v3538_v54 = vld [vmem:[#allocation2 + $0x384] ss:$16 sps:$4 sm:$0xff]   ;;  %v3541_v55 = vld [vmem:[#allocation2 + $0x38c] ss:$16 sps:$4 sm:$0xff]  }
  0x5b   :  { %1298 = vmatpush1.bf16.msra.mxu0 %v3450_v56  ;;  %1462 = vmatpush1.bf16.msra.mxu1 %v3451_v57  ;;  %v3536_v56 = vld [vmem:[#allocation2 + $0x380] ss:$16 sps:$4 sm:$0xff]   ;;  %v3539_v57 = vld [vmem:[#allocation2 + $0x388] ss:$16 sps:$4 sm:$0xff]  }
  0x5c   :  { %1299 = vmatprep.subr.bf16.mxu0 %v3452_v58  ;;  %1463 = vmatprep.subr.bf16.mxu1 %v3454_v59  ;;  %v3544_v58 = vld [vmem:[#allocation2 + $0x3a4] ss:$16 sps:$4 sm:$0xff]   ;;  %v3547_v59 = vld [vmem:[#allocation2 + $0x3ac] ss:$16 sps:$4 sm:$0xff]  }
  0x5f   :  { %1300 = vmatpush1.bf16.msra.mxu0 %v3456_v60  ;;  %1464 = vmatpush1.bf16.msra.mxu1 %v3457_v61  ;;  %v3542_v60 = vld [vmem:[#allocation2 + $0x3a0] ss:$16 sps:$4 sm:$0xff]   ;;  %v3545_v61 = vld [vmem:[#allocation2 + $0x3a8] ss:$16 sps:$4 sm:$0xff]  }
  0x60   :  { %1301 = vmatprep.subr.bf16.mxu0 %v3458_v62  ;;  %1465 = vmatprep.subr.bf16.mxu1 %v3460_v63  ;;  %v3550_v62 = vld [vmem:[#allocation2 + $0x3c4] ss:$16 sps:$4 sm:$0xff]   ;;  %v3553_v63 = vld [vmem:[#allocation2 + $0x3cc] ss:$16 sps:$4 sm:$0xff]  }
  0x63   :  { %1302 = vmatpush1.bf16.msra.mxu0 %v3462_v0  ;;  %1466 = vmatpush1.bf16.msra.mxu1 %v3463_v1  ;;  %v3548_v0 = vld [vmem:[#allocation2 + $0x3c0] ss:$16 sps:$4 sm:$0xff]   ;;  %v3551_v1 = vld [vmem:[#allocation2 + $0x3c8] ss:$16 sps:$4 sm:$0xff]  }
  0x64   :  { %1312 = vmatprep.subr.bf16.mxu0 %v3466_v3  ;;  %1476 = vmatprep.subr.bf16.mxu1 %v3469_v4  ;;  %v3559_v3 = vld [vmem:[#allocation2 + $0x3ec] ss:$16 sps:$4 sm:$0xff]   ;;  %v3554_v4 = vld [vmem:[#allocation2 + $0x3e0] ss:$16 sps:$4 sm:$0xff]  }
  0x66   :  { %1304 = vmatmul.mubr.bf16.vlgmr.msra.gmra.mrb[0].mxu0 %v62_v5  ;;  %1468 = vmatmul.mubr.bf16.vlgmr.msra.gmra.mrb[0].mxu1 %v62_v5  ;;  %v3557_v5 = vld [vmem:[#allocation2 + $0x3e8] ss:$16 sps:$4 sm:$0xff]  }
  0x67   :  { %1313 = vmatpush1.bf16.msra.mxu0 %v3464_v6  ;;  %1477 = vmatpush1.bf16.msra.mxu1 %v3467_v7  ;;  %v3562_v6 = vld [vmem:[#allocation2 + $0x404] ss:$16 sps:$4 sm:$0xff]  }
  0x68   :  { %1314 = vmatprep.subr.bf16.mxu0 %v3472_v8  ;;  %1478 = vmatprep.subr.bf16.mxu1 %v3475_v9  ;;  %v57_v7 = vld [vmem:[%s4163_s0 + $0x10] sm:$0xff]  ;;  %v3565_v8 = vld [vmem:[#allocation2 + $0x40c] ss:$16 sps:$4 sm:$0xff]  }
  0x69   :  { %1344 = vmatprep.mubr.bf16.mxu0 %v65_v32  ;;  %1508 = vmatprep.mubr.bf16.mxu1 %v65_v32  ;;  %v3560_v9 = vld [vmem:[#allocation2 + $0x400] ss:$16 sps:$4 sm:$0xff]  }
  0x6a   :  { %v3590_v32 = vld [vmem:[#allocation2 + $0x4a0] ss:$16 sps:$4 sm:$0xff]  }
  0x6b   :  { %1315 = vmatpush1.bf16.msra.mxu0 %v3470_v10  ;;  %1479 = vmatpush1.bf16.msra.mxu1 %v3473_v11  ;;  %v64_v10 = vpack.c.bf16 %v57_v7, %v57_v7  ;;  %v3563_v11 = vld [vmem:[#allocation2 + $0x408] ss:$16 sps:$4 sm:$0xff]   ;;  %v3655_v7 = vld [vmem:[#allocation2 + $0x5ec] ss:$16 sps:$4 sm:$0xff]  }
  0x6c   :  { %1316 = vmatprep.subr.bf16.mxu0 %v3478_v12  ;;  %1480 = vmatprep.subr.bf16.mxu1 %v3481_v13  ;;  %v3568_v12 = vld [vmem:[#allocation2 + $0x424] ss:$16 sps:$4 sm:$0xff]   ;;  %v3571_v13 = vld [vmem:[#allocation2 + $0x42c] ss:$16 sps:$4 sm:$0xff]  }
  0x6f   :  { %1317 = vmatpush1.bf16.msra.mxu0 %v3476_v14  ;;  %1481 = vmatpush1.bf16.msra.mxu1 %v3479_v15  ;;  %v60_v14 = vld [vmem:[%s4163_s0 + $0x28] sm:$0xff] }
  0x70   :  { %1318 = vmatprep.subr.bf16.mxu0 %v3484_v16  ;;  %1482 = vmatprep.subr.bf16.mxu1 %v3487_v17  ;;  %v67_v15 = vpack.c.bf16 %v60_v14, %v60_v14  ;;  %v3566_v16 = vld [vmem:[#allocation2 + $0x420] ss:$16 sps:$4 sm:$0xff]   ;;  %v3569_v17 = vld [vmem:[#allocation2 + $0x428] ss:$16 sps:$4 sm:$0xff]  }
  0x71   :  { %v3659_v14 = vld [vmem:[#allocation2 + $0x608] ss:$16 sps:$4 sm:$0xff]  }
  0x73   :  { %1319 = vmatpush1.bf16.msra.mxu0 %v3482_v18  ;;  %1483 = vmatpush1.bf16.msra.mxu1 %v3485_v19  ;;  %v3574_v18 = vld [vmem:[#allocation2 + $0x444] ss:$16 sps:$4 sm:$0xff]   ;;  %v3577_v19 = vld [vmem:[#allocation2 + $0x44c] ss:$16 sps:$4 sm:$0xff]  }
  0x74   :  { %1320 = vmatprep.subr.bf16.mxu0 %v3490_v20  ;;  %1484 = vmatprep.subr.bf16.mxu1 %v3493_v21  ;;  %v3572_v20 = vld [vmem:[#allocation2 + $0x440] ss:$16 sps:$4 sm:$0xff]   ;;  %v3575_v21 = vld [vmem:[#allocation2 + $0x448] ss:$16 sps:$4 sm:$0xff]  }
  0x77   :  { %1321 = vmatpush1.bf16.msra.mxu0 %v3488_v22  ;;  %1485 = vmatpush1.bf16.msra.mxu1 %v3491_v23  ;;  %v3580_v22 = vld [vmem:[#allocation2 + $0x464] ss:$16 sps:$4 sm:$0xff]   ;;  %v3583_v23 = vld [vmem:[#allocation2 + $0x46c] ss:$16 sps:$4 sm:$0xff]  }
  0x78   :  { %1322 = vmatprep.subr.bf16.mxu0 %v3496_v24  ;;  %1486 = vmatprep.subr.bf16.mxu1 %v3499_v25  ;;  %v3578_v24 = vld [vmem:[#allocation2 + $0x460] ss:$16 sps:$4 sm:$0xff]   ;;  %v3581_v25 = vld [vmem:[#allocation2 + $0x468] ss:$16 sps:$4 sm:$0xff]  }
  0x7b   :  { %1323 = vmatpush1.bf16.msra.mxu0 %v3494_v26  ;;  %1487 = vmatpush1.bf16.msra.mxu1 %v3497_v27  ;;  %v3586_v26 = vld [vmem:[#allocation2 + $0x484] ss:$16 sps:$4 sm:$0xff]   ;;  %v3589_v27 = vld [vmem:[#allocation2 + $0x48c] ss:$16 sps:$4 sm:$0xff]  }
  0x7c   :  { %1324 = vmatprep.subr.bf16.mxu0 %v3502_v28  ;;  %1488 = vmatprep.subr.bf16.mxu1 %v3505_v29  ;;  %v3584_v28 = vld [vmem:[#allocation2 + $0x480] ss:$16 sps:$4 sm:$0xff]   ;;  %v3587_v29 = vld [vmem:[#allocation2 + $0x488] ss:$16 sps:$4 sm:$0xff]  }
  0x7f   :  { %1325 = vmatpush1.bf16.msra.mxu0 %v3500_v31  ;;  %1489 = vmatpush1.bf16.msra.mxu1 %v3503_v33  ;;  %v3595_v31 = vld [vmem:[#allocation2 + $0x4ac] ss:$16 sps:$4 sm:$0xff]   ;;  %v3593_v33 = vld [vmem:[#allocation2 + $0x4a8] ss:$16 sps:$4 sm:$0xff]  }
  0x80   :  { %1326 = vmatprep.subr.bf16.mxu0 %v3508_v34  ;;  %1490 = vmatprep.subr.bf16.mxu1 %v3511_v35  ;;  %v3598_v34 = vld [vmem:[#allocation2 + $0x4c4] ss:$16 sps:$4 sm:$0xff]   ;;  %v3601_v35 = vld [vmem:[#allocation2 + $0x4cc] ss:$16 sps:$4 sm:$0xff]  }
  0x83   :  { %1327 = vmatpush1.bf16.msra.mxu0 %v3506_v36  ;;  %1491 = vmatpush1.bf16.msra.mxu1 %v3509_v37  ;;  %v3596_v36 = vld [vmem:[#allocation2 + $0x4c0] ss:$16 sps:$4 sm:$0xff]   ;;  %v3599_v37 = vld [vmem:[#allocation2 + $0x4c8] ss:$16 sps:$4 sm:$0xff]  }
  0x84   :  { %1328 = vmatprep.subr.bf16.mxu0 %v3514_v38  ;;  %1492 = vmatprep.subr.bf16.mxu1 %v3517_v39  ;;  %v3604_v38 = vld [vmem:[#allocation2 + $0x4e4] ss:$16 sps:$4 sm:$0xff]   ;;  %v3607_v39 = vld [vmem:[#allocation2 + $0x4ec] ss:$16 sps:$4 sm:$0xff]  }
  0x87   :  { %1329 = vmatpush1.bf16.msra.mxu0 %v3512_v40  ;;  %1493 = vmatpush1.bf16.msra.mxu1 %v3515_v41  ;;  %v3602_v40 = vld [vmem:[#allocation2 + $0x4e0] ss:$16 sps:$4 sm:$0xff]   ;;  %v3605_v41 = vld [vmem:[#allocation2 + $0x4e8] ss:$16 sps:$4 sm:$0xff]  }
  0x88   :  { %1330 = vmatprep.subr.bf16.mxu0 %v3520_v42  ;;  %1494 = vmatprep.subr.bf16.mxu1 %v3523_v43  ;;  %v3610_v42 = vld [vmem:[#allocation2 + $0x504] ss:$16 sps:$4 sm:$0xff]   ;;  %v3613_v43 = vld [vmem:[#allocation2 + $0x50c] ss:$16 sps:$4 sm:$0xff]  }
  0x8b   :  { %1331 = vmatpush1.bf16.msra.mxu0 %v3518_v44  ;;  %1495 = vmatpush1.bf16.msra.mxu1 %v3521_v45  ;;  %v3608_v44 = vld [vmem:[#allocation2 + $0x500] ss:$16 sps:$4 sm:$0xff]   ;;  %v3611_v45 = vld [vmem:[#allocation2 + $0x508] ss:$16 sps:$4 sm:$0xff]  }
  0x8c   :  { %1332 = vmatprep.subr.bf16.mxu0 %v3526_v46  ;;  %1496 = vmatprep.subr.bf16.mxu1 %v3529_v47  ;;  %v3616_v46 = vld [vmem:[#allocation2 + $0x524] ss:$16 sps:$4 sm:$0xff]   ;;  %v3619_v47 = vld [vmem:[#allocation2 + $0x52c] ss:$16 sps:$4 sm:$0xff]  }
  0x8f   :  { %1333 = vmatpush1.bf16.msra.mxu0 %v3524_v48  ;;  %1497 = vmatpush1.bf16.msra.mxu1 %v3527_v49  ;;  %v3614_v48 = vld [vmem:[#allocation2 + $0x520] ss:$16 sps:$4 sm:$0xff]   ;;  %v3617_v49 = vld [vmem:[#allocation2 + $0x528] ss:$16 sps:$4 sm:$0xff]  }
  0x90   :  { %1334 = vmatprep.subr.bf16.mxu0 %v3532_v50  ;;  %1498 = vmatprep.subr.bf16.mxu1 %v3535_v51  ;;  %v3622_v50 = vld [vmem:[#allocation2 + $0x544] ss:$16 sps:$4 sm:$0xff]   ;;  %v3625_v51 = vld [vmem:[#allocation2 + $0x54c] ss:$16 sps:$4 sm:$0xff]  }
  0x93   :  { %1335 = vmatpush1.bf16.msra.mxu0 %v3530_v52  ;;  %1499 = vmatpush1.bf16.msra.mxu1 %v3533_v53  ;;  %v3620_v52 = vld [vmem:[#allocation2 + $0x540] ss:$16 sps:$4 sm:$0xff]   ;;  %v3623_v53 = vld [vmem:[#allocation2 + $0x548] ss:$16 sps:$4 sm:$0xff]  }
  0x94   :  { %1336 = vmatprep.subr.bf16.mxu0 %v3538_v54  ;;  %1500 = vmatprep.subr.bf16.mxu1 %v3541_v55  ;;  %v3628_v54 = vld [vmem:[#allocation2 + $0x564] ss:$16 sps:$4 sm:$0xff]   ;;  %v3631_v55 = vld [vmem:[#allocation2 + $0x56c] ss:$16 sps:$4 sm:$0xff]  }
  0x97   :  { %1337 = vmatpush1.bf16.msra.mxu0 %v3536_v56  ;;  %1501 = vmatpush1.bf16.msra.mxu1 %v3539_v57  ;;  %v3626_v56 = vld [vmem:[#allocation2 + $0x560] ss:$16 sps:$4 sm:$0xff]   ;;  %v3629_v57 = vld [vmem:[#allocation2 + $0x568] ss:$16 sps:$4 sm:$0xff]  }
  0x98   :  { %1338 = vmatprep.subr.bf16.mxu0 %v3544_v58  ;;  %1502 = vmatprep.subr.bf16.mxu1 %v3547_v59  ;;  %v3634_v58 = vld [vmem:[#allocation2 + $0x584] ss:$16 sps:$4 sm:$0xff]   ;;  %v3637_v59 = vld [vmem:[#allocation2 + $0x58c] ss:$16 sps:$4 sm:$0xff]  }
  0x9b   :  { %1339 = vmatpush1.bf16.msra.mxu0 %v3542_v60  ;;  %1503 = vmatpush1.bf16.msra.mxu1 %v3545_v61  ;;  %v3632_v60 = vld [vmem:[#allocation2 + $0x580] ss:$16 sps:$4 sm:$0xff]   ;;  %v3635_v61 = vld [vmem:[#allocation2 + $0x588] ss:$16 sps:$4 sm:$0xff]  }
  0x9c   :  { %1340 = vmatprep.subr.bf16.mxu0 %v3550_v62  ;;  %1504 = vmatprep.subr.bf16.mxu1 %v3553_v63  ;;  %v3640_v62 = vld [vmem:[#allocation2 + $0x5a4] ss:$16 sps:$4 sm:$0xff]   ;;  %v3643_v63 = vld [vmem:[#allocation2 + $0x5ac] ss:$16 sps:$4 sm:$0xff]  }
  0x9f   :  { %1341 = vmatpush1.bf16.msra.mxu0 %v3548_v0  ;;  %1505 = vmatpush1.bf16.msra.mxu1 %v3551_v1  ;;  %v3638_v0 = vld [vmem:[#allocation2 + $0x5a0] ss:$16 sps:$4 sm:$0xff]   ;;  %v3641_v1 = vld [vmem:[#allocation2 + $0x5a8] ss:$16 sps:$4 sm:$0xff]  }
  0xa0   :  { %1342 = vmatprep.subr.bf16.mxu0 %v3556_v2  ;;  %1506 = vmatprep.subr.bf16.mxu1 %v3559_v3  ;;  %v3646_v2 = vld [vmem:[#allocation2 + $0x5c4] ss:$16 sps:$4 sm:$0xff]   ;;  %v3649_v3 = vld [vmem:[#allocation2 + $0x5cc] ss:$16 sps:$4 sm:$0xff]  }
  0xa3   :  { %1343 = vmatpush1.bf16.msra.mxu0 %v3554_v4  ;;  %1507 = vmatpush1.bf16.msra.mxu1 %v3557_v5  ;;  %v3644_v4 = vld [vmem:[#allocation2 + $0x5c0] ss:$16 sps:$4 sm:$0xff]   ;;  %v3647_v5 = vld [vmem:[#allocation2 + $0x5c8] ss:$16 sps:$4 sm:$0xff]  }
  0xa4   :  { %1353 = vmatprep.subr.bf16.mxu0 %v3562_v6  ;;  %1517 = vmatprep.subr.bf16.mxu1 %v3565_v8  ;;  %v3652_v6 = vld [vmem:[#allocation2 + $0x5e4] ss:$16 sps:$4 sm:$0xff]   ;;  %v3650_v8 = vld [vmem:[#allocation2 + $0x5e0] ss:$16 sps:$4 sm:$0xff]  }
  0xa6   :  { %1345 = vmatmul.mubr.bf16.vlgmr.msra.gmra.mrb[0].mxu0 %v64_v10  ;;  %1509 = vmatmul.mubr.bf16.vlgmr.msra.gmra.mrb[0].mxu1 %v64_v10  ;;  %v59_v10 = vld [vmem:[%s4163_s0 + $0x20] sm:$0xff] }
  0xa7   :  { %1354 = vmatpush1.bf16.msra.mxu0 %v3560_v9  ;;  %1518 = vmatpush1.bf16.msra.mxu1 %v3563_v11  ;;  %v3653_v9 = vld [vmem:[#allocation2 + $0x5e8] ss:$16 sps:$4 sm:$0xff]   ;;  %v3658_v11 = vld [vmem:[#allocation2 + $0x604] ss:$16 sps:$4 sm:$0xff]  }
  0xa8   :  { %1355 = vmatprep.subr.bf16.mxu0 %v3568_v12  ;;  %1519 = vmatprep.subr.bf16.mxu1 %v3571_v13  ;;  %v3661_v12 = vld [vmem:[#allocation2 + $0x60c] ss:$16 sps:$4 sm:$0xff]   ;;  %v3656_v13 = vld [vmem:[#allocation2 + $0x600] ss:$16 sps:$4 sm:$0xff]  }
  0xa9   :  { %1385 = vmatprep.mubr.bf16.mxu0 %v67_v15  ;;  %1549 = vmatprep.mubr.bf16.mxu1 %v67_v15  ;;  %v66_v15 = vpack.c.bf16 %v59_v10, %v59_v10  ;;  %v3743_v10 = vld [vmem:[#allocation4 + $0x1a8] ss:$16 sps:$4 sm:$0xff]  }
  0xab   :  { %1356 = vmatpush1.bf16.msra.mxu0 %v3566_v16  ;;  %1520 = vmatpush1.bf16.msra.mxu1 %v3569_v17  ;;  %v3664_v16 = vld [vmem:[#allocation4 + $0x4] ss:$16 sps:$4 sm:$0xff]   ;;  %v3667_v17 = vld [vmem:[#allocation4 + $0xc] ss:$16 sps:$4 sm:$0xff]  }
  0xac   :  { %1357 = vmatprep.subr.bf16.mxu0 %v3574_v18  ;;  %1521 = vmatprep.subr.bf16.mxu1 %v3577_v19  ;;  %v3938_v18 = vmov 0   ;;  %v61_v19 = vld [vmem:[%s4163_s0 + $0x30] sm:$0xff] }
  0xaf   :  { %1358 = vmatpush1.bf16.msra.mxu0 %v3572_v20  ;;  %1522 = vmatpush1.bf16.msra.mxu1 %v3575_v21  ;;  %v3662_v20 = vld [vmem:[#allocation4] ss:$16 sps:$4 sm:$0xff]   ;;  %v3665_v21 = vld [vmem:[#allocation4 + $0x8] ss:$16 sps:$4 sm:$0xff]  }
  0xb0   :  { %1359 = vmatprep.subr.bf16.mxu0 %v3580_v22  ;;  %1523 = vmatprep.subr.bf16.mxu1 %v3583_v23  ;;  %v68_v22 = vpack.c.bf16 %v61_v19, %v61_v19  ;;  %v3670_v23 = vld [vmem:[#allocation4 + $0x24] ss:$16 sps:$4 sm:$0xff]  }
  0xb1   :  { %v3760_v19 = vld [vmem:[#allocation4 + $0x204] ss:$16 sps:$4 sm:$0xff]  }
  0xb3   :  { %1360 = vmatpush1.bf16.msra.mxu0 %v3578_v24  ;;  %1524 = vmatpush1.bf16.msra.mxu1 %v3581_v25  ;;  %v3673_v24 = vld [vmem:[#allocation4 + $0x2c] ss:$16 sps:$4 sm:$0xff]   ;;  %v3668_v25 = vld [vmem:[#allocation4 + $0x20] ss:$16 sps:$4 sm:$0xff]  }
  0xb4   :  { %1361 = vmatprep.subr.bf16.mxu0 %v3586_v26  ;;  %1525 = vmatprep.subr.bf16.mxu1 %v3589_v27  ;;  %v3671_v26 = vld [vmem:[#allocation4 + $0x28] ss:$16 sps:$4 sm:$0xff]   ;;  %v3676_v27 = vld [vmem:[#allocation4 + $0x44] ss:$16 sps:$4 sm:$0xff]  }
  0xb7   :  { %1362 = vmatpush1.bf16.msra.mxu0 %v3584_v28  ;;  %1526 = vmatpush1.bf16.msra.mxu1 %v3587_v29  ;;  %v3679_v28 = vld [vmem:[#allocation4 + $0x4c] ss:$16 sps:$4 sm:$0xff]   ;;  %v3674_v29 = vld [vmem:[#allocation4 + $0x40] ss:$16 sps:$4 sm:$0xff]  }
  0xb8   :  { %1363 = vmatprep.subr.bf16.mxu0 %v3592_v30  ;;  %1527 = vmatprep.subr.bf16.mxu1 %v3595_v31  ;;  %v3677_v30 = vld [vmem:[#allocation4 + $0x48] ss:$16 sps:$4 sm:$0xff]   ;;  %v3682_v31 = vld [vmem:[#allocation4 + $0x64] ss:$16 sps:$4 sm:$0xff]  }
  0xbb   :  { %1364 = vmatpush1.bf16.msra.mxu0 %v3590_v32  ;;  %1528 = vmatpush1.bf16.msra.mxu1 %v3593_v33  ;;  %v3685_v32 = vld [vmem:[#allocation4 + $0x6c] ss:$16 sps:$4 sm:$0xff]   ;;  %v3680_v33 = vld [vmem:[#allocation4 + $0x60] ss:$16 sps:$4 sm:$0xff]  }
  0xbc   :  { %1365 = vmatprep.subr.bf16.mxu0 %v3598_v34  ;;  %1529 = vmatprep.subr.bf16.mxu1 %v3601_v35  ;;  %v3683_v34 = vld [vmem:[#allocation4 + $0x68] ss:$16 sps:$4 sm:$0xff]   ;;  %v3688_v35 = vld [vmem:[#allocation4 + $0x84] ss:$16 sps:$4 sm:$0xff]  }
  0xbf   :  { %1366 = vmatpush1.bf16.msra.mxu0 %v3596_v36  ;;  %1530 = vmatpush1.bf16.msra.mxu1 %v3599_v37  ;;  %v3691_v36 = vld [vmem:[#allocation4 + $0x8c] ss:$16 sps:$4 sm:$0xff]   ;;  %v3686_v37 = vld [vmem:[#allocation4 + $0x80] ss:$16 sps:$4 sm:$0xff]  }
  0xc0   :  { %1367 = vmatprep.subr.bf16.mxu0 %v3604_v38  ;;  %1531 = vmatprep.subr.bf16.mxu1 %v3607_v39  ;;  %v3689_v38 = vld [vmem:[#allocation4 + $0x88] ss:$16 sps:$4 sm:$0xff]   ;;  %v3694_v39 = vld [vmem:[#allocation4 + $0xa4] ss:$16 sps:$4 sm:$0xff]  }
  0xc3   :  { %1368 = vmatpush1.bf16.msra.mxu0 %v3602_v40  ;;  %1532 = vmatpush1.bf16.msra.mxu1 %v3605_v41  ;;  %v3697_v40 = vld [vmem:[#allocation4 + $0xac] ss:$16 sps:$4 sm:$0xff]   ;;  %v3692_v41 = vld [vmem:[#allocation4 + $0xa0] ss:$16 sps:$4 sm:$0xff]  }
  0xc4   :  { %1369 = vmatprep.subr.bf16.mxu0 %v3610_v42  ;;  %1533 = vmatprep.subr.bf16.mxu1 %v3613_v43  ;;  %v3695_v42 = vld [vmem:[#allocation4 + $0xa8] ss:$16 sps:$4 sm:$0xff]   ;;  %v3700_v43 = vld [vmem:[#allocation4 + $0xc4] ss:$16 sps:$4 sm:$0xff]  }
  0xc7   :  { %1370 = vmatpush1.bf16.msra.mxu0 %v3608_v44  ;;  %1534 = vmatpush1.bf16.msra.mxu1 %v3611_v45  ;;  %v3703_v44 = vld [vmem:[#allocation4 + $0xcc] ss:$16 sps:$4 sm:$0xff]   ;;  %v3698_v45 = vld [vmem:[#allocation4 + $0xc0] ss:$16 sps:$4 sm:$0xff]  }
  0xc8   :  { %1371 = vmatprep.subr.bf16.mxu0 %v3616_v46  ;;  %1535 = vmatprep.subr.bf16.mxu1 %v3619_v47  ;;  %v3701_v46 = vld [vmem:[#allocation4 + $0xc8] ss:$16 sps:$4 sm:$0xff]   ;;  %v3706_v47 = vld [vmem:[#allocation4 + $0xe4] ss:$16 sps:$4 sm:$0xff]  }
  0xcb   :  { %1372 = vmatpush1.bf16.msra.mxu0 %v3614_v48  ;;  %1536 = vmatpush1.bf16.msra.mxu1 %v3617_v49  ;;  %v3709_v48 = vld [vmem:[#allocation4 + $0xec] ss:$16 sps:$4 sm:$0xff]   ;;  %v3704_v49 = vld [vmem:[#allocation4 + $0xe0] ss:$16 sps:$4 sm:$0xff]  }
  0xcc   :  { %1373 = vmatprep.subr.bf16.mxu0 %v3622_v50  ;;  %1537 = vmatprep.subr.bf16.mxu1 %v3625_v51  ;;  %v3707_v50 = vld [vmem:[#allocation4 + $0xe8] ss:$16 sps:$4 sm:$0xff]   ;;  %v3712_v51 = vld [vmem:[#allocation4 + $0x104] ss:$16 sps:$4 sm:$0xff]  }
  0xcf   :  { %1374 = vmatpush1.bf16.msra.mxu0 %v3620_v52  ;;  %1538 = vmatpush1.bf16.msra.mxu1 %v3623_v53  ;;  %v3715_v52 = vld [vmem:[#allocation4 + $0x10c] ss:$16 sps:$4 sm:$0xff]   ;;  %v3710_v53 = vld [vmem:[#allocation4 + $0x100] ss:$16 sps:$4 sm:$0xff]  }
  0xd0   :  { %1375 = vmatprep.subr.bf16.mxu0 %v3628_v54  ;;  %1539 = vmatprep.subr.bf16.mxu1 %v3631_v55  ;;  %v3713_v54 = vld [vmem:[#allocation4 + $0x108] ss:$16 sps:$4 sm:$0xff]   ;;  %v3718_v55 = vld [vmem:[#allocation4 + $0x124] ss:$16 sps:$4 sm:$0xff]  }
  0xd3   :  { %1376 = vmatpush1.bf16.msra.mxu0 %v3626_v56  ;;  %1540 = vmatpush1.bf16.msra.mxu1 %v3629_v57  ;;  %v3721_v56 = vld [vmem:[#allocation4 + $0x12c] ss:$16 sps:$4 sm:$0xff]   ;;  %v3716_v57 = vld [vmem:[#allocation4 + $0x120] ss:$16 sps:$4 sm:$0xff]  }
  0xd4   :  { %1377 = vmatprep.subr.bf16.mxu0 %v3634_v58  ;;  %1541 = vmatprep.subr.bf16.mxu1 %v3637_v59  ;;  %v3719_v58 = vld [vmem:[#allocation4 + $0x128] ss:$16 sps:$4 sm:$0xff]   ;;  %v3724_v59 = vld [vmem:[#allocation4 + $0x144] ss:$16 sps:$4 sm:$0xff]  }
  0xd7   :  { %1378 = vmatpush1.bf16.msra.mxu0 %v3632_v60  ;;  %1542 = vmatpush1.bf16.msra.mxu1 %v3635_v61  ;;  %v3727_v60 = vld [vmem:[#allocation4 + $0x14c] ss:$16 sps:$4 sm:$0xff]   ;;  %v3722_v61 = vld [vmem:[#allocation4 + $0x140] ss:$16 sps:$4 sm:$0xff]  }
  0xd8   :  { %1379 = vmatprep.subr.bf16.mxu0 %v3640_v62  ;;  %1543 = vmatprep.subr.bf16.mxu1 %v3643_v63  ;;  %v3725_v62 = vld [vmem:[#allocation4 + $0x148] ss:$16 sps:$4 sm:$0xff]   ;;  %v3730_v63 = vld [vmem:[#allocation4 + $0x164] ss:$16 sps:$4 sm:$0xff]  }
  0xdb   :  { %1380 = vmatpush1.bf16.msra.mxu0 %v3638_v0  ;;  %1544 = vmatpush1.bf16.msra.mxu1 %v3641_v1  ;;  %v3733_v0 = vld [vmem:[#allocation4 + $0x16c] ss:$16 sps:$4 sm:$0xff]   ;;  %v3728_v1 = vld [vmem:[#allocation4 + $0x160] ss:$16 sps:$4 sm:$0xff]  }
  0xdc   :  { %1381 = vmatprep.subr.bf16.mxu0 %v3646_v2  ;;  %1545 = vmatprep.subr.bf16.mxu1 %v3649_v3  ;;  %v3731_v2 = vld [vmem:[#allocation4 + $0x168] ss:$16 sps:$4 sm:$0xff]   ;;  %v3736_v3 = vld [vmem:[#allocation4 + $0x184] ss:$16 sps:$4 sm:$0xff]  }
  0xdf   :  { %1382 = vmatpush1.bf16.msra.mxu0 %v3644_v4  ;;  %1546 = vmatpush1.bf16.msra.mxu1 %v3647_v5  ;;  %v3739_v4 = vld [vmem:[#allocation4 + $0x18c] ss:$16 sps:$4 sm:$0xff]   ;;  %v3734_v5 = vld [vmem:[#allocation4 + $0x180] ss:$16 sps:$4 sm:$0xff]  }
  0xe0   :  { %1383 = vmatprep.subr.bf16.mxu0 %v3652_v6  ;;  %1547 = vmatprep.subr.bf16.mxu1 %v3655_v7  ;;  %v3737_v6 = vld [vmem:[#allocation4 + $0x188] ss:$16 sps:$4 sm:$0xff]   ;;  %v3742_v7 = vld [vmem:[#allocation4 + $0x1a4] ss:$16 sps:$4 sm:$0xff]  }
  0xe3   :  { %1384 = vmatpush1.bf16.msra.mxu0 %v3650_v8  ;;  %1548 = vmatpush1.bf16.msra.mxu1 %v3653_v9  ;;  %v3745_v8 = vld [vmem:[#allocation4 + $0x1ac] ss:$16 sps:$4 sm:$0xff]   ;;  %v3740_v9 = vld [vmem:[#allocation4 + $0x1a0] ss:$16 sps:$4 sm:$0xff]  }
  0xe4   :  { %1394 = vmatprep.subr.bf16.mxu0 %v3658_v11  ;;  %1558 = vmatprep.subr.bf16.mxu1 %v3661_v12  ;;  %v3748_v11 = vld [vmem:[#allocation4 + $0x1c4] ss:$16 sps:$4 sm:$0xff]   ;;  %v3751_v12 = vld [vmem:[#allocation4 + $0x1cc] ss:$16 sps:$4 sm:$0xff]  }
  0xe6   :  { %1386 = vmatmul.mubr.bf16.vlgmr.msra.gmra.mrb[0].mxu0 %v66_v15  ;;  %1550 = vmatmul.mubr.bf16.vlgmr.msra.gmra.mrb[0].mxu1 %v66_v15  ;;  %v3754_v15 = vld [vmem:[#allocation4 + $0x1e4] ss:$16 sps:$4 sm:$0xff]  }
  0xe7   :  { %1395 = vmatpush1.bf16.msra.mxu0 %v3656_v13  ;;  %1559 = vmatpush1.bf16.msra.mxu1 %v3659_v14  ;;  %v3746_v13 = vld [vmem:[#allocation4 + $0x1c0] ss:$16 sps:$4 sm:$0xff]   ;;  %v3749_v14 = vld [vmem:[#allocation4 + $0x1c8] ss:$16 sps:$4 sm:$0xff]  }
  0xe8   :  { %1426 = vmatprep.mubr.bf16.mxu0 %v3938_v18  ;;  %1590 = vmatprep.mubr.bf16.mxu1 %v3938_v18  ;;  %v3755_v18 = vld [vmem:[#allocation4 + $0x1e8] ss:$16 sps:$4 sm:$0xff]  }
  0xe9   :  { %2397 = vmatprep.subr.bf16.mxu0 %v3664_v16  ;;  %2479 = vmatprep.subr.bf16.mxu1 %v3667_v17  ;;  %v3757_v16 = vld [vmem:[#allocation4 + $0x1ec] ss:$16 sps:$4 sm:$0xff]   ;;  %v3752_v17 = vld [vmem:[#allocation4 + $0x1e0] ss:$16 sps:$4 sm:$0xff]  }
  0xf2   :  { %3116 = vmatmul.mubr.msk.bf16.vlgmr.msra.gmra.mrb[0].mxu0 %vm1267_vm0, %v68_v22  ;;  %3117 = vmatmul.mubr.msk.bf16.vlgmr.msra.gmra.mrb[0].mxu1 %vm1267_vm0, %v68_v22 }
  0xf3   :  { %2398 = vmatpush1.bf16.msra.mxu0 %v3662_v20  ;;  %2480 = vmatpush1.bf16.msra.mxu1 %v3665_v21  ;;  %v3763_v20 = vld [vmem:[#allocation4 + $0x20c] ss:$16 sps:$4 sm:$0xff]   ;;  %v267_v21 = vlaneseq }
  0xf4   :  { %2399 = vmatprep.subr.bf16.mxu0 %v3670_v23  ;;  %2481 = vmatprep.subr.bf16.mxu1 %v3673_v24  ;;  %v4030_v24 = vld [vmem:[%s4165_s2] sm:$0xf] }
  0xf5   :  { %v4024_v22 = vshrl.u32 %v267_v21, 7  ;;  %v3820_v21 = vld [vmem:[#allocation4 + $0x344] ss:$16 sps:$4 sm:$0xff]  }
  0xf7   :  { %2400 = vmatpush1.bf16.msra.mxu0 %v3668_v25  ;;  %2482 = vmatpush1.bf16.msra.mxu1 %v3671_v26  ;;  %v269_v23 = vsub.s32 0, %v4024_v22  ;;  %v273_v25 = vsub.s32 1, %v4024_v22  ;;  %v281_v26 = vsub.s32 3, %v4024_v22 }
  0xf8   :  { %2401 = vmatprep.subr.bf16.mxu0 %v3676_v27  ;;  %2483 = vmatprep.subr.bf16.mxu1 %v3679_v28 }
  0xf9   :  { %v270_v27 = vrot.slane %v4030_v24, %v269_v23  ;;  %v274_v28 = vrot.slane %v4030_v24, %v273_v25 }
  0xfb   :  { %2402 = vmatpush1.bf16.msra.mxu0 %v3674_v29  ;;  %2484 = vmatpush1.bf16.msra.mxu1 %v3677_v30  ;;  %v282_v29 = vrot.slane %v4030_v24, %v281_v26 }
  0xfc   :  { %2403 = vmatprep.subr.bf16.mxu0 %v3682_v31  ;;  %2485 = vmatprep.subr.bf16.mxu1 %v3685_v32 }
  0xff   :  { %2404 = vmatpush1.bf16.msra.mxu0 %v3680_v33  ;;  %2486 = vmatpush1.bf16.msra.mxu1 %v3683_v34 }
 0x100   :  { %2405 = vmatprep.subr.bf16.mxu0 %v3688_v35  ;;  %2487 = vmatprep.subr.bf16.mxu1 %v3691_v36 }
 0x103   :  { %2406 = vmatpush1.bf16.msra.mxu0 %v3686_v37  ;;  %2488 = vmatpush1.bf16.msra.mxu1 %v3689_v38 }
 0x104   :  { %2407 = vmatprep.subr.bf16.mxu0 %v3694_v39  ;;  %2489 = vmatprep.subr.bf16.mxu1 %v3697_v40 }
 0x107   :  { %2408 = vmatpush1.bf16.msra.mxu0 %v3692_v41  ;;  %2490 = vmatpush1.bf16.msra.mxu1 %v3695_v42 }
 0x108   :  { %2409 = vmatprep.subr.bf16.mxu0 %v3700_v43  ;;  %2491 = vmatprep.subr.bf16.mxu1 %v3703_v44 }
 0x10b   :  { %2410 = vmatpush1.bf16.msra.mxu0 %v3698_v45  ;;  %2492 = vmatpush1.bf16.msra.mxu1 %v3701_v46  ;;  %v3758_v45 = vld [vmem:[#allocation4 + $0x200] ss:$16 sps:$4 sm:$0xff]   ;;  %v3761_v46 = vld [vmem:[#allocation4 + $0x208] ss:$16 sps:$4 sm:$0xff]  }
 0x10c   :  { %2411 = vmatprep.subr.bf16.mxu0 %v3706_v47  ;;  %2493 = vmatprep.subr.bf16.mxu1 %v3709_v48  ;;  %v3766_v48 = vld [vmem:[#allocation4 + $0x224] ss:$16 sps:$4 sm:$0xff]  }
 0x10f   :  { %2412 = vmatpush1.bf16.msra.mxu0 %v3704_v49  ;;  %2494 = vmatpush1.bf16.msra.mxu1 %v3707_v50  ;;  %v3769_v49 = vld [vmem:[#allocation4 + $0x22c] ss:$16 sps:$4 sm:$0xff]  }
 0x110   :  { %2413 = vmatprep.subr.bf16.mxu0 %v3712_v51  ;;  %2495 = vmatprep.subr.bf16.mxu1 %v3715_v52  ;;  %v3764_v51 = vld [vmem:[#allocation4 + $0x220] ss:$16 sps:$4 sm:$0xff]   ;;  %v3767_v52 = vld [vmem:[#allocation4 + $0x228] ss:$16 sps:$4 sm:$0xff]  }
 0x113   :  { %2414 = vmatpush1.bf16.msra.mxu0 %v3710_v53  ;;  %2496 = vmatpush1.bf16.msra.mxu1 %v3713_v54  ;;  %v3772_v53 = vld [vmem:[#allocation4 + $0x244] ss:$16 sps:$4 sm:$0xff]   ;;  %v3775_v54 = vld [vmem:[#allocation4 + $0x24c] ss:$16 sps:$4 sm:$0xff]  }
 0x114   :  { %2415 = vmatprep.subr.bf16.mxu0 %v3718_v55  ;;  %2497 = vmatprep.subr.bf16.mxu1 %v3721_v56  ;;  %v3770_v55 = vld [vmem:[#allocation4 + $0x240] ss:$16 sps:$4 sm:$0xff]   ;;  %v3773_v56 = vld [vmem:[#allocation4 + $0x248] ss:$16 sps:$4 sm:$0xff]  }
 0x117   :  { %2416 = vmatpush1.bf16.msra.mxu0 %v3716_v57  ;;  %2498 = vmatpush1.bf16.msra.mxu1 %v3719_v58  ;;  %v3778_v57 = vld [vmem:[#allocation4 + $0x264] ss:$16 sps:$4 sm:$0xff]   ;;  %v3781_v58 = vld [vmem:[#allocation4 + $0x26c] ss:$16 sps:$4 sm:$0xff]  }
 0x118   :  { %2417 = vmatprep.subr.bf16.mxu0 %v3724_v59  ;;  %2499 = vmatprep.subr.bf16.mxu1 %v3727_v60  ;;  %v3776_v59 = vld [vmem:[#allocation4 + $0x260] ss:$16 sps:$4 sm:$0xff]   ;;  %v3779_v60 = vld [vmem:[#allocation4 + $0x268] ss:$16 sps:$4 sm:$0xff]  }
 0x11b   :  { %2418 = vmatpush1.bf16.msra.mxu0 %v3722_v61  ;;  %2500 = vmatpush1.bf16.msra.mxu1 %v3725_v62  ;;  %v3784_v61 = vld [vmem:[#allocation4 + $0x284] ss:$16 sps:$4 sm:$0xff]   ;;  %v3787_v62 = vld [vmem:[#allocation4 + $0x28c] ss:$16 sps:$4 sm:$0xff]  }
 0x11c   :  { %2419 = vmatprep.subr.bf16.mxu0 %v3730_v63  ;;  %2501 = vmatprep.subr.bf16.mxu1 %v3733_v0  ;;  %v3782_v63 = vld [vmem:[#allocation4 + $0x280] ss:$16 sps:$4 sm:$0xff]   ;;  %v3785_v0 = vld [vmem:[#allocation4 + $0x288] ss:$16 sps:$4 sm:$0xff]  }
 0x11f   :  { %2420 = vmatpush1.bf16.msra.mxu0 %v3728_v1  ;;  %2502 = vmatpush1.bf16.msra.mxu1 %v3731_v2  ;;  %v3790_v1 = vld [vmem:[#allocation4 + $0x2a4] ss:$16 sps:$4 sm:$0xff]   ;;  %v3793_v2 = vld [vmem:[#allocation4 + $0x2ac] ss:$16 sps:$4 sm:$0xff]  }
 0x120   :  { %2421 = vmatprep.subr.bf16.mxu0 %v3736_v3  ;;  %2503 = vmatprep.subr.bf16.mxu1 %v3739_v4  ;;  %v3788_v3 = vld [vmem:[#allocation4 + $0x2a0] ss:$16 sps:$4 sm:$0xff]   ;;  %v3791_v4 = vld [vmem:[#allocation4 + $0x2a8] ss:$16 sps:$4 sm:$0xff]  }
 0x123   :  { %2422 = vmatpush1.bf16.msra.mxu0 %v3734_v5  ;;  %2504 = vmatpush1.bf16.msra.mxu1 %v3737_v6  ;;  %v3796_v5 = vld [vmem:[#allocation4 + $0x2c4] ss:$16 sps:$4 sm:$0xff]   ;;  %v3799_v6 = vld [vmem:[#allocation4 + $0x2cc] ss:$16 sps:$4 sm:$0xff]  }
 0x124   :  { %2423 = vmatprep.subr.bf16.mxu0 %v3742_v7  ;;  %2505 = vmatprep.subr.bf16.mxu1 %v3745_v8  ;;  %v3794_v7 = vld [vmem:[#allocation4 + $0x2c0] ss:$16 sps:$4 sm:$0xff]   ;;  %v3797_v8 = vld [vmem:[#allocation4 + $0x2c8] ss:$16 sps:$4 sm:$0xff]  }
 0x127   :  { %2424 = vmatpush1.bf16.msra.mxu0 %v3740_v9  ;;  %2506 = vmatpush1.bf16.msra.mxu1 %v3743_v10  ;;  %v3802_v9 = vld [vmem:[#allocation4 + $0x2e4] ss:$16 sps:$4 sm:$0xff]   ;;  %v3805_v10 = vld [vmem:[#allocation4 + $0x2ec] ss:$16 sps:$4 sm:$0xff]  }
 0x128   :  { %2425 = vmatprep.subr.bf16.mxu0 %v3748_v11  ;;  %2507 = vmatprep.subr.bf16.mxu1 %v3751_v12  ;;  %v3800_v11 = vld [vmem:[#allocation4 + $0x2e0] ss:$16 sps:$4 sm:$0xff]   ;;  %v3803_v12 = vld [vmem:[#allocation4 + $0x2e8] ss:$16 sps:$4 sm:$0xff]  }
 0x12b   :  { %2426 = vmatpush1.bf16.msra.mxu0 %v3746_v13  ;;  %2508 = vmatpush1.bf16.msra.mxu1 %v3749_v14  ;;  %v3808_v13 = vld [vmem:[#allocation4 + $0x304] ss:$16 sps:$4 sm:$0xff]   ;;  %v3811_v14 = vld [vmem:[#allocation4 + $0x30c] ss:$16 sps:$4 sm:$0xff]  }
 0x12c   :  { %2427 = vmatprep.subr.bf16.mxu0 %v3754_v15  ;;  %2509 = vmatprep.subr.bf16.mxu1 %v3757_v16  ;;  %v3806_v15 = vld [vmem:[#allocation4 + $0x300] ss:$16 sps:$4 sm:$0xff]   ;;  %v3809_v16 = vld [vmem:[#allocation4 + $0x308] ss:$16 sps:$4 sm:$0xff]  }
 0x12f   :  { %2428 = vmatpush1.bf16.msra.mxu0 %v3752_v17  ;;  %2510 = vmatpush1.bf16.msra.mxu1 %v3755_v18  ;;  %v3814_v17 = vld [vmem:[#allocation4 + $0x324] ss:$16 sps:$4 sm:$0xff]   ;;  %v3817_v18 = vld [vmem:[#allocation4 + $0x32c] ss:$16 sps:$4 sm:$0xff]  }
 0x130   :  { %2438 = vmatprep.subr.bf16.mxu0 %v3760_v19  ;;  %2520 = vmatprep.subr.bf16.mxu1 %v3763_v20  ;;  %v3812_v19 = vld [vmem:[#allocation4 + $0x320] ss:$16 sps:$4 sm:$0xff]   ;;  %v3815_v20 = vld [vmem:[#allocation4 + $0x328] ss:$16 sps:$4 sm:$0xff]  }
 0x1c5   :  { %v1428_v30 = vpop.f32.mrb[0].mxu0  ;;  %v4043_v31 = vpop.f32.mrb[0].mxu1 }
 0x1c6   :  { %v3323_v32 = vadd.f32 %v1428_v30, %v270_v27  ;;  %v1430_v33 = vpop.f32.mrb[1].mxu0  ;;  %v1594_v34 = vpop.f32.mrb[1].mxu1  ;;  %v3823_v27 = vld [vmem:[#allocation4 + $0x34c] ss:$16 sps:$4 sm:$0xff]   ;;  %v3826_v30 = vld [vmem:[#allocation4 + $0x364] ss:$16 sps:$4 sm:$0xff]  }
 0x1c7   :  { %v3324_v35 = vadd.f32 %v1430_v33, %v274_v28  ;;  %v3326_v36 = vadd.f32 %v1594_v34, %v282_v29  ;;  %v1432_v37 = vpop.f32.mrb[2].mxu0  ;;  %v1596_v38 = vpop.f32.mrb[2].mxu1  ;;  %v3818_v28 = vld [vmem:[#allocation4 + $0x340] ss:$16 sps:$4 sm:$0xff]   ;;  %v3821_v29 = vld [vmem:[#allocation4 + $0x348] ss:$16 sps:$4 sm:$0xff]  }
 0x1c8   :  { %v1599_v39 = vmax.f32 %v3323_v32, 0.0  ;;  %v1433_v40 = vpop.f32.mrb[3].mxu0  ;;  %v1597_v41 = vpop.f32.mrb[3].mxu1  ;;  %v3829_v32 = vld [vmem:[#allocation4 + $0x36c] ss:$16 sps:$4 sm:$0xff]  }
 0x1c9   :  { %v1600_v42 = vmax.f32 %v3324_v35, 0.0  ;;  %v1602_v43 = vmax.f32 %v3326_v36, 0.0  ;;  %v3824_v33 = vld [vmem:[#allocation4 + $0x360] ss:$16 sps:$4 sm:$0xff]   ;;  %v3827_v34 = vld [vmem:[#allocation4 + $0x368] ss:$16 sps:$4 sm:$0xff]  }
 0x1ca   :  { %v1603_v47 = vpack.c.bf16 %v1599_v39, %v1599_v39  ;;  %v3832_v35 = vld [vmem:[#allocation4 + $0x384] ss:$16 sps:$4 sm:$0xff]   ;;  %v3835_v36 = vld [vmem:[#allocation4 + $0x38c] ss:$16 sps:$4 sm:$0xff]   ;;  %v3830_v37 = vld [vmem:[#allocation4 + $0x380] ss:$16 sps:$4 sm:$0xff]  }
 0x1cb   :  { %v1604_v44 = vpack.c.bf16 %v1600_v42, %v1600_v42  ;;  %v1606_v50 = vpack.c.bf16 %v1602_v43, %v1602_v43  ;;  %v3833_v38 = vld [vmem:[#allocation4 + $0x388] ss:$16 sps:$4 sm:$0xff]   ;;  %v277_v39 = vsub.s32 2, %v4024_v22  ;;  %v3838_v40 = vld [vmem:[#allocation4 + $0x3a4] ss:$16 sps:$4 sm:$0xff]  }
 0x1cc   :  { %v3841_v41 = vld [vmem:[#allocation4 + $0x3ac] ss:$16 sps:$4 sm:$0xff]   ;;  %v3836_v42 = vld [vmem:[#allocation4 + $0x3a0] ss:$16 sps:$4 sm:$0xff]   ;;  %v3839_v43 = vld [vmem:[#allocation4 + $0x3a8] ss:$16 sps:$4 sm:$0xff]  }
 0x1cd   :  { %2429 = vmatprep.mubr.bf16.mxu0 %v1604_v44  ;;  %2511 = vmatprep.mubr.bf16.mxu1 %v1604_v44  ;;  %v278_v44 = vrot.slane %v4030_v24, %v277_v39  ;;  %v3854_v24 = vld [vmem:[%s4168_s5 + $0x40] sm:$0xff]  }
 0x1ce   :  { %2430 = vmatmul.mubr.bf16.vlgmr.msra.gmra.mrb[4].mxu0 %v1603_v47  ;;  %2512 = vmatmul.mubr.bf16.vlgmr.msra.gmra.mrb[4].mxu1 %v1603_v47  ;;  %v3842_v47 = vld [vmem:[#allocation4 + $0x3c0] ss:$16 sps:$4 sm:$0xff]  }
 0x1cf   :  { %2439 = vmatpush1.bf16.msra.mxu0 %v3758_v45  ;;  %2521 = vmatpush1.bf16.msra.mxu1 %v3761_v46  ;;  %v3844_v45 = vld [vmem:[#allocation4 + $0x3c4] ss:$16 sps:$4 sm:$0xff]   ;;  %v3847_v46 = vld [vmem:[#allocation4 + $0x3cc] ss:$16 sps:$4 sm:$0xff]  }
 0x1d0   :  { %2470 = vmatprep.mubr.bf16.mxu0 %v1606_v50  ;;  %2552 = vmatprep.mubr.bf16.mxu1 %v1606_v50  ;;  %v3850_v50 = vld [vmem:[#allocation4 + $0x3e4] ss:$16 sps:$4 sm:$0xff]  }
 0x1d1   :  { %2440 = vmatprep.subr.bf16.mxu0 %v3766_v48  ;;  %2522 = vmatprep.subr.bf16.mxu1 %v3769_v49  ;;  %v3845_v48 = vld [vmem:[#allocation4 + $0x3c8] ss:$16 sps:$4 sm:$0xff]   ;;  %v3325_v49 = vadd.f32 %v4043_v31, %v278_v44  ;;  %v3856_v31 = vld [vmem:[%s4168_s5] sm:$0xff]  }
 0x1d3   :  { %2441 = vmatpush1.bf16.msra.mxu0 %v3764_v51  ;;  %2523 = vmatpush1.bf16.msra.mxu1 %v3767_v52  ;;  %v3853_v51 = vld [vmem:[#allocation4 + $0x3ec] ss:$16 sps:$4 sm:$0xff]   ;;  %v3848_v52 = vld [vmem:[#allocation4 + $0x3e0] ss:$16 sps:$4 sm:$0xff]  }
 0x1d4   :  { %2442 = vmatprep.subr.bf16.mxu0 %v3772_v53  ;;  %2524 = vmatprep.subr.bf16.mxu1 %v3775_v54  ;;  %v3851_v53 = vld [vmem:[#allocation4 + $0x3e8] ss:$16 sps:$4 sm:$0xff]   ;;  %v1601_v54 = vmax.f32 %v3325_v49, 0.0 }
 0x1d7   :  { %2443 = vmatpush1.bf16.msra.mxu0 %v3770_v55  ;;  %2525 = vmatpush1.bf16.msra.mxu1 %v3773_v56  ;;  %v3855_v55 = vld [vmem:[%s4168_s5 + $0xc0] sm:$0xff]  }
 0x1d8   :  { %2444 = vmatprep.subr.bf16.mxu0 %v3778_v57  ;;  %2526 = vmatprep.subr.bf16.mxu1 %v3781_v58  ;;  %v3857_v56 = vld [vmem:[%s4168_s5 + $0x80] sm:$0xff]   ;;  %v1605_v57 = vpack.c.bf16 %v1601_v54, %v1601_v54  ;;  %v3858_v58 = vld [vmem:[%s4168_s5 + $0x48] sm:$0xff]  }
 0x1db   :  { %2445 = vmatpush1.bf16.msra.mxu0 %v3776_v59  ;;  %2527 = vmatpush1.bf16.msra.mxu1 %v3779_v60  ;;  %v3859_v59 = vld [vmem:[%s4168_s5 + $0xc8] sm:$0xff]  }
 0x1dc   :  { %2446 = vmatprep.subr.bf16.mxu0 %v3784_v61  ;;  %2528 = vmatprep.subr.bf16.mxu1 %v3787_v62  ;;  %v3860_v60 = vld [vmem:[%s4168_s5 + $0x8] sm:$0xff]   ;;  %v3862_v62 = vld [vmem:[%s4168_s5 + $0x50] sm:$0xff]  }
 0x1dd   :  { %v3861_v61 = vld [vmem:[%s4168_s5 + $0x88] sm:$0xff]  }
 0x1df   :  { %2447 = vmatpush1.bf16.msra.mxu0 %v3782_v63  ;;  %2529 = vmatpush1.bf16.msra.mxu1 %v3785_v0  ;;  %v3863_v63 = vld [vmem:[%s4168_s5 + $0xd0] sm:$0xff]  }
 0x1e0   :  { %2448 = vmatprep.subr.bf16.mxu0 %v3790_v1  ;;  %2530 = vmatprep.subr.bf16.mxu1 %v3793_v2  ;;  %v3864_v0 = vld [vmem:[%s4168_s5 + $0x10] sm:$0xff]   ;;  %v3866_v2 = vld [vmem:[%s4168_s5 + $0x58] sm:$0xff]  }
 0x1e1   :  { %v3865_v1 = vld [vmem:[%s4168_s5 + $0x90] sm:$0xff]  }
 0x1e3   :  { %2449 = vmatpush1.bf16.msra.mxu0 %v3788_v3  ;;  %2531 = vmatpush1.bf16.msra.mxu1 %v3791_v4  ;;  %v3867_v3 = vld [vmem:[%s4168_s5 + $0xd8] sm:$0xff]  }
 0x1e4   :  { %2450 = vmatprep.subr.bf16.mxu0 %v3796_v5  ;;  %2532 = vmatprep.subr.bf16.mxu1 %v3799_v6  ;;  %v3868_v4 = vld [vmem:[%s4168_s5 + $0x18] sm:$0xff]   ;;  %v3870_v6 = vld [vmem:[%s4168_s5 + $0x60] sm:$0xff]  }
 0x1e5   :  { %v3869_v5 = vld [vmem:[%s4168_s5 + $0x98] sm:$0xff]  }
 0x1e7   :  { %2451 = vmatpush1.bf16.msra.mxu0 %v3794_v7  ;;  %2533 = vmatpush1.bf16.msra.mxu1 %v3797_v8  ;;  %v3871_v7 = vld [vmem:[%s4168_s5 + $0xe0] sm:$0xff]  }
 0x1e8   :  { %2452 = vmatprep.subr.bf16.mxu0 %v3802_v9  ;;  %2534 = vmatprep.subr.bf16.mxu1 %v3805_v10  ;;  %v3872_v8 = vld [vmem:[%s4168_s5 + $0x20] sm:$0xff]   ;;  %v3874_v10 = vld [vmem:[%s4168_s5 + $0x68] sm:$0xff]  }
 0x1e9   :  { %v3873_v9 = vld [vmem:[%s4168_s5 + $0xa0] sm:$0xff]  }
 0x1eb   :  { %2453 = vmatpush1.bf16.msra.mxu0 %v3800_v11  ;;  %2535 = vmatpush1.bf16.msra.mxu1 %v3803_v12  ;;  %v3875_v11 = vld [vmem:[%s4168_s5 + $0xe8] sm:$0xff]  }
 0x1ec   :  { %2454 = vmatprep.subr.bf16.mxu0 %v3808_v13  ;;  %2536 = vmatprep.subr.bf16.mxu1 %v3811_v14  ;;  %v3876_v12 = vld [vmem:[%s4168_s5 + $0x28] sm:$0xff]   ;;  %v3878_v14 = vld [vmem:[%s4168_s5 + $0x70] sm:$0xff]  }
 0x1ed   :  { %v3877_v13 = vld [vmem:[%s4168_s5 + $0xa8] sm:$0xff]  }
 0x1ef   :  { %2455 = vmatpush1.bf16.msra.mxu0 %v3806_v15  ;;  %2537 = vmatpush1.bf16.msra.mxu1 %v3809_v16  ;;  %v3879_v15 = vld [vmem:[%s4168_s5 + $0xf0] sm:$0xff]  }
 0x1f0   :  { %2456 = vmatprep.subr.bf16.mxu0 %v3814_v17  ;;  %2538 = vmatprep.subr.bf16.mxu1 %v3817_v18  ;;  %v3880_v16 = vld [vmem:[%s4168_s5 + $0x30] sm:$0xff]   ;;  %v3882_v18 = vld [vmem:[%s4168_s5 + $0x78] sm:$0xff]  }
 0x1f1   :  { %v3881_v17 = vld [vmem:[%s4168_s5 + $0xb0] sm:$0xff]  }
 0x1f3   :  { %2457 = vmatpush1.bf16.msra.mxu0 %v3812_v19  ;;  %2539 = vmatpush1.bf16.msra.mxu1 %v3815_v20  ;;  %v3883_v19 = vld [vmem:[%s4168_s5 + $0xf8] sm:$0xff]  }
 0x1f4   :  { %2458 = vmatprep.subr.bf16.mxu0 %v3820_v21  ;;  %2540 = vmatprep.subr.bf16.mxu1 %v3823_v27  ;;  %v3884_v20 = vld [vmem:[%s4168_s5 + $0x38] sm:$0xff]   ;;  %v1735_v27 = vld [vmem:[%s4167_s4] sm:$0xf] }
 0x1f5   :  { %v3885_v21 = vld [vmem:[%s4168_s5 + $0xb8] sm:$0xff]  }
 0x1f7   :  { %2459 = vmatpush1.bf16.msra.mxu0 %v3818_v28  ;;  %2541 = vmatpush1.bf16.msra.mxu1 %v3821_v29  ;;  %v1740_v28 = vrot.slane %v1735_v27, %v269_v23  ;;  %v1748_v29 = vrot.slane %v1735_v27, %v277_v39 }
 0x1f8   :  { %2460 = vmatprep.subr.bf16.mxu0 %v3826_v30  ;;  %2542 = vmatprep.subr.bf16.mxu1 %v3829_v32  ;;  %v1744_v30 = vrot.slane %v1735_v27, %v273_v25  ;;  %v1752_v32 = vrot.slane %v1735_v27, %v281_v26 }
 0x1fb   :  { %2461 = vmatpush1.bf16.msra.mxu0 %v3824_v33  ;;  %2543 = vmatpush1.bf16.msra.mxu1 %v3827_v34 }
 0x1fc   :  { %2462 = vmatprep.subr.bf16.mxu0 %v3832_v35  ;;  %2544 = vmatprep.subr.bf16.mxu1 %v3835_v36 }
 0x1ff   :  { %2463 = vmatpush1.bf16.msra.mxu0 %v3830_v37  ;;  %2545 = vmatpush1.bf16.msra.mxu1 %v3833_v38 }
 0x200   :  { %2464 = vmatprep.subr.bf16.mxu0 %v3838_v40  ;;  %2546 = vmatprep.subr.bf16.mxu1 %v3841_v41 }
 0x203   :  { %2465 = vmatpush1.bf16.msra.mxu0 %v3836_v42  ;;  %2547 = vmatpush1.bf16.msra.mxu1 %v3839_v43 }
 0x204   :  { %2466 = vmatprep.subr.bf16.mxu0 %v3844_v45  ;;  %2548 = vmatprep.subr.bf16.mxu1 %v3847_v46 }
 0x207   :  { %2467 = vmatpush1.bf16.msra.mxu0 %v3842_v47  ;;  %2549 = vmatpush1.bf16.msra.mxu1 %v3845_v48 }
 0x208   :  { %2468 = vmatprep.subr.bf16.mxu0 %v3850_v50  ;;  %2550 = vmatprep.subr.bf16.mxu1 %v3853_v51  ;;  %v3246_v51 = vld [vmem:[%s4169_s6] ss:$0 sm:$0xff] }
 0x20b   :  { %2469 = vmatpush1.bf16.msra.mxu0 %v3848_v52  ;;  %2551 = vmatpush1.bf16.msra.mxu1 %v3851_v53 }
 0x20c   :  { %3279 = vmatprep.subr.bf16.mxu0 %v3854_v24  ;;  %3301 = vmatprep.subr.bf16.mxu1 %v3855_v55 }
 0x20e   :  { %2471 = vmatmul.mubr.bf16.vlgmr.msra.gmra.mrb[4].mxu0 %v1605_v57  ;;  %2553 = vmatmul.mubr.bf16.vlgmr.msra.gmra.mrb[4].mxu1 %v1605_v57 }
 0x20f   :  { %3280 = vmatpush3.bf16.msra.mxu0 %v3856_v31  ;;  %3302 = vmatpush3.bf16.msra.mxu1 %v3857_v56 }
 0x210   :  { %3281 = vmatprep.subr.bf16.mxu0 %v3858_v58  ;;  %3303 = vmatprep.subr.bf16.mxu1 %v3859_v59 }
 0x213   :  { %3282 = vmatpush3.bf16.msra.mxu0 %v3860_v60  ;;  %3304 = vmatpush3.bf16.msra.mxu1 %v3861_v61 }
 0x214   :  { %3283 = vmatprep.subr.bf16.mxu0 %v3862_v62  ;;  %3305 = vmatprep.subr.bf16.mxu1 %v3863_v63 }
 0x217   :  { %3284 = vmatpush3.bf16.msra.mxu0 %v3864_v0  ;;  %3306 = vmatpush3.bf16.msra.mxu1 %v3865_v1 }
 0x218   :  { %3285 = vmatprep.subr.bf16.mxu0 %v3866_v2  ;;  %3307 = vmatprep.subr.bf16.mxu1 %v3867_v3 }
 0x21b   :  { %3286 = vmatpush3.bf16.msra.mxu0 %v3868_v4  ;;  %3308 = vmatpush3.bf16.msra.mxu1 %v3869_v5 }
 0x21c   :  { %3287 = vmatprep.subr.bf16.mxu0 %v3870_v6  ;;  %3309 = vmatprep.subr.bf16.mxu1 %v3871_v7 }
 0x21f   :  { %3288 = vmatpush3.bf16.msra.mxu0 %v3872_v8  ;;  %3310 = vmatpush3.bf16.msra.mxu1 %v3873_v9 }
 0x220   :  { %3289 = vmatprep.subr.bf16.mxu0 %v3874_v10  ;;  %3311 = vmatprep.subr.bf16.mxu1 %v3875_v11 }
 0x223   :  { %3290 = vmatpush3.bf16.msra.mxu0 %v3876_v12  ;;  %3312 = vmatpush3.bf16.msra.mxu1 %v3877_v13 }
 0x224   :  { %3291 = vmatprep.subr.bf16.mxu0 %v3878_v14  ;;  %3313 = vmatprep.subr.bf16.mxu1 %v3879_v15 }
 0x227   :  { %3292 = vmatpush3.bf16.msra.mxu0 %v3880_v16  ;;  %3314 = vmatpush3.bf16.msra.mxu1 %v3881_v17 }
 0x228   :  { %3293 = vmatprep.subr.bf16.mxu0 %v3882_v18  ;;  %3315 = vmatprep.subr.bf16.mxu1 %v3883_v19 }
 0x22b   :  { %3294 = vmatpush3.bf16.msra.mxu0 %v3884_v20  ;;  %3316 = vmatpush3.bf16.msra.mxu1 %v3885_v21 }
 0x2e1   :  { %v2472_v33 = vpop.f32.mrb[4].mxu0  ;;  %v2554_v34 = vpop.f32.mrb[4].mxu1 }
 0x2e2   :  { %v3327_v35 = vadd.f32 %v2472_v33, %v1740_v28  ;;  %v3329_v36 = vadd.f32 %v2554_v34, %v1748_v29  ;;  %v2474_v37 = vpop.f32.mrb[5].mxu0  ;;  %v2556_v38 = vpop.f32.mrb[5].mxu1 }
 0x2e3   :  { %v3328_v40 = vadd.f32 %v2474_v37, %v1744_v30  ;;  %v3330_v41 = vadd.f32 %v2556_v38, %v1752_v32  ;;  %v2476_v42 = vpop.f32.mrb[6].mxu0  ;;  %v2558_v43 = vpop.f32.mrb[6].mxu1 }
 0x2e4   :  { %v2561_v23 = vmax.f32 %v3327_v35, 0.0  ;;  %v2563_v44 = vmax.f32 %v3329_v36, 0.0  ;;  %v2477_v45 = vpop.f32.mrb[7].mxu0  ;;  %v2559_v39 = vpop.f32.mrb[7].mxu1 }
 0x2e5   :  { %v2562_v46 = vmax.f32 %v3328_v40, 0.0  ;;  %v2564_v47 = vmax.f32 %v3330_v41, 0.0 }
 0x2e6   :  { %v2565_v22 = vpack.c.bf16 %v2561_v23, %v2561_v23  ;;  %v2567_v26 = vpack.c.bf16 %v2563_v44, %v2563_v44 }
 0x2e7   :  { %v2566_v25 = vpack.c.bf16 %v2562_v46, %v2562_v46  ;;  %v2568_v48 = vpack.c.bf16 %v2564_v47, %v2564_v47 }
 0x2e9   :  { %2864 = vmatprep.mubr.bf16.mxu0 %v2566_v25  ;;  %2904 = vmatprep.mubr.bf16.mxu1 %v2568_v48 }
 0x2ea   :  { %2865 = vmatmul.mubr.bf16.vlgmr.msra.gmra.mrb[8].mxu0 %v2565_v22  ;;  %2905 = vmatmul.mubr.bf16.vlgmr.msra.gmra.mrb[8].mxu1 %v2567_v26 }
 0x3bd   :  { %v3295_v49 = vpop.f32.mrb[8].mxu0  ;;  %v3317_v50 = vpop.f32.mrb[8].mxu1 }
 0x3be   :  { %v3296_v52 = vpop.f32.mrb[9].mxu0  ;;  %v3318_v53 = vpop.f32.mrb[9].mxu1 }
 0x3bf   :  { %v3297_v54 = vadd.f32 %v3296_v52, %v3295_v49  ;;  %v3319_v24 = vadd.f32 %v3318_v53, %v3317_v50  ;;  %v3298_v55 = vpop.f32.mrb[10].mxu0  ;;  %v3320_v31 = vpop.f32.mrb[10].mxu1 }
 0x3c0   :  { %v3299_v56 = vpop.f32.mrb[11].mxu0  ;;  %v3321_v57 = vpop.f32.mrb[11].mxu1 }
 0x3c1   :  { %v2867_v58 = vadd.f32 %v3297_v54, %v3246_v51 }
 0x3c3   :  { %v2907_v59 = vadd.f32 %v3319_v24, %v2867_v58 }
 0x3c5   :  { %v2912_v60 = vmax.f32 %v2907_v59, 0.0 }
 0x3c7   :  { %2913 = vst [vmem:[%s4170_s7] sm:$0xff] %v2912_v60 }
 0x3c8   :  { %2918 = vsyncpa [#allocation3], 1 }
 0x3c9   :  { %2919 = vsyncpa [#allocation5], 1 }

</bundles_post_ra>
